<compile_context>
chip_gen: v6e
topology: v6e:2x2x1
jax: 0.10.0
libtpu: 0.0.40
codegen_flags: <defaults>
</compile_context>

<pallas_src>
import functools
import math

import jax
import jax.numpy as jnp
from jax.experimental import pallas as pl
from jax.experimental.pallas import tpu as pltpu

# ---------------------------- model hyper-params ----------------------------
DMODEL = 32
DEPTH = 2
HEADS = 4
VOCAB_SIZE = 64
NUM_BUCKETS = 32          # unused by the full-attention approximation
NUM_BIO_LABELS = 77
FF_MULT = 4               # Reformer FeedForward default mult
UNK_IDX = 1
LABEL_PAD = 128           # lane-dense padded output width (sliced to 77 outside)

D_BATCH = 2               # d
N_SEQ = 8                 # n


# ----------------------------- helpers (in-kernel) ---------------------------
def _layer_norm(x, gamma, beta, eps=1e-5):
    mu = jnp.mean(x, axis=-1, keepdims=True)
    var = jnp.mean(jnp.square(x - mu), axis=-1, keepdims=True)
    return (x - mu) * jax.lax.rsqrt(var + eps) * gamma + beta


# ------------------------------ fused kernel ---------------------------------
def fused_kernel(idx_ref, table_ref, pos_ref, bias_ref,
                 ln1g_ref, ln1b_ref, wqkv_ref, wo_ref,
                 ln2g_ref, ln2b_ref, w1_ref, b1_ref, w2_ref, b2_ref,
                 wa_ref, ba_ref, wb_ref, bb_ref,
                 o_ref, *, d, n, m, heads, depth, vocab):
    dn = d * n
    dh = m // heads
    scale = 1.0 / math.sqrt(dh)

    # ---- embedding: UNK clamp + flat one-hot matmul gather + pos encoding ----
    idx = idx_ref[...]                                    # (dn, 1) int32
    idx = jnp.where(idx >= vocab, UNK_IDX, idx)           # clamp OOV -> UNK
    # TODO(synk): negative indices silently embed to zero here (PyTorch would error).
    iota = jax.lax.broadcasted_iota(jnp.int32, (dn, vocab), 1)
    onehot = (idx == iota).astype(jnp.float32)            # (dn, vocab)
    x = jnp.dot(onehot, table_ref[...], preferred_element_type=jnp.float32)
    x = x + pos_ref[...]                                  # (dn, m)

    attn_bias = bias_ref[...]                             # (dn, dn) block-diag 0 / -1e30

    # ---- encoder blocks (depth unrolled; all weights VMEM-resident) ----
    for li in range(depth):
        # pre-norm multi-head self-attention (fused QKV, per-head accumulate)
        h = _layer_norm(x, ln1g_ref[li], ln1b_ref[li])
        qkv = jnp.dot(h, wqkv_ref[li], preferred_element_type=jnp.float32)  # (dn, 3m)
        wo = wo_ref[li]                                    # (m, m)
        attn = jnp.zeros((dn, m), jnp.float32)
        for hi in range(heads):
            q_h = qkv[:, hi * dh:(hi + 1) * dh]                    # (dn, dh)
            k_h = qkv[:, m + hi * dh:m + (hi + 1) * dh]            # (dn, dh)
            v_h = qkv[:, 2 * m + hi * dh:2 * m + (hi + 1) * dh]    # (dn, dh)
            s = jax.lax.dot_general(q_h, k_h, (((1,), (1,)), ((), ())),
                                    preferred_element_type=jnp.float32)
            p = jax.nn.softmax(s * scale + attn_bias, axis=-1)      # (dn, dn)
            ctx = jnp.dot(p, v_h, preferred_element_type=jnp.float32)
            attn = attn + jnp.dot(ctx, wo[hi * dh:(hi + 1) * dh, :],
                                  preferred_element_type=jnp.float32)
        x = x + attn

        # pre-norm feed-forward (GELU)
        h2 = _layer_norm(x, ln2g_ref[li], ln2b_ref[li])
        f = jax.nn.gelu(
            jnp.dot(h2, w1_ref[li], preferred_element_type=jnp.float32)
            + b1_ref[li])
        x = x + (jnp.dot(f, w2_ref[li], preferred_element_type=jnp.float32)
                 + b2_ref[li])

    # ---- head: Linear -> ReLU -> Linear -> ReLU -> sigmoid (lane-padded) ----
    hh = jnp.maximum(
        jnp.dot(x, wa_ref[...], preferred_element_type=jnp.float32)
        + ba_ref[...], 0.0)
    z = jnp.maximum(
        jnp.dot(hh, wb_ref[...], preferred_element_type=jnp.float32)
        + bb_ref[...], 0.0)
    o_ref[...] = jax.nn.sigmoid(z).astype(o_ref.dtype)     # (dn, LABEL_PAD)


# ----------------------------- plain-JAX glue ---------------------------------
def position_encoding(n, dmodel):
    pos = jnp.arange(n, dtype=jnp.float32)[:, None]                    # (n, 1)
    power = jnp.arange(0, dmodel, 2, dtype=jnp.float32) / float(dmodel)
    denom = jnp.power(10000.0, power)[None, :]                         # (1, m/2)
    ang = pos / denom                                                  # (n, m/2)
    enc = jnp.zeros((n, dmodel), jnp.float32)
    enc = enc.at[:, 0::2].set(jnp.sin(ang))
    enc = enc.at[:, 1::2].set(jnp.cos(ang))
    return enc


def init_params(key):
    ks = jax.random.split(key, 32)
    ki = iter(range(32))
    nrm = lambda shape, s=0.02: (
        jax.random.normal(ks[next(ki)], shape, jnp.float32) * s)

    params = {
        "embedding": jax.random.normal(ks[next(ki)], (VOCAB_SIZE, DMODEL),
                                       jnp.float32),
        "layers": [],
        "head": {
            "wa": nrm((DMODEL, DMODEL // 2)),
            "ba": jnp.zeros((1, DMODEL // 2), jnp.float32),
            "wb": nrm((DMODEL // 2, NUM_BIO_LABELS)),
            "bb": jnp.zeros((1, NUM_BIO_LABELS), jnp.float32),
        },
    }
    ff_hid = FF_MULT * DMODEL
    for _ in range(DEPTH):
        params["layers"].append({
            "ln1g": jnp.ones((1, DMODEL), jnp.float32),
            "ln1b": jnp.zeros((1, DMODEL), jnp.float32),
            "wq": nrm((DMODEL, DMODEL)),
            "wk": nrm((DMODEL, DMODEL)),
            "wv": nrm((DMODEL, DMODEL)),
            "wo": nrm((DMODEL, DMODEL)),
            "ln2g": jnp.ones((1, DMODEL), jnp.float32),
            "ln2b": jnp.zeros((1, DMODEL), jnp.float32),
            "w1": nrm((DMODEL, ff_hid)),
            "b1": jnp.zeros((1, ff_hid), jnp.float32),
            "w2": nrm((ff_hid, DMODEL)),
            "b2": jnp.zeros((1, DMODEL), jnp.float32),
        })
    return params


def genia_reformer_forward(params, input_indices):
    d, n = input_indices.shape
    dn = d * n

    # small host-side prep (constant-folded under jit)
    pos = jnp.tile(position_encoding(n, DMODEL), (d, 1))               # (dn, m)
    idx = input_indices.astype(jnp.int32).reshape(dn, 1)               # (dn, 1)
    row_b = jnp.repeat(jnp.arange(d, dtype=jnp.int32), n)              # (dn,)
    attn_bias = jnp.where(row_b[:, None] == row_b[None, :],
                          0.0, -1e30).astype(jnp.float32)              # (dn, dn)

    layers = params["layers"]
    stack = lambda key_: jnp.stack([lp[key_] for lp in layers], axis=0)
    wqkv = jnp.stack(
        [jnp.concatenate([lp["wq"], lp["wk"], lp["wv"]], axis=1)       # (m, 3m)
         for lp in layers], axis=0)

    hp = params["head"]
    wb_pad = jnp.pad(hp["wb"], ((0, 0), (0, LABEL_PAD - NUM_BIO_LABELS)))
    bb_pad = jnp.pad(hp["bb"], ((0, 0), (0, LABEL_PAD - NUM_BIO_LABELS)))

    vmem = pl.BlockSpec(memory_space=pltpu.MemorySpace.VMEM)
    out = pl.pallas_call(
        functools.partial(fused_kernel, d=d, n=n, m=DMODEL, heads=HEADS,
                          depth=DEPTH, vocab=VOCAB_SIZE),
        out_shape=jax.ShapeDtypeStruct((dn, LABEL_PAD), jnp.float32),
        in_specs=[vmem] * 18,
        out_specs=vmem,
    )(idx, params["embedding"], pos, attn_bias,
      stack("ln1g"), stack("ln1b"), wqkv, stack("wo"),
      stack("ln2g"), stack("ln2b"),
      stack("w1"), stack("b1"), stack("w2"), stack("b2"),
      hp["wa"], hp["ba"], wb_pad, bb_pad)

    # drop lane padding and restore (d, n, labels)
    return out[:, :NUM_BIO_LABELS].reshape(d, n, NUM_BIO_LABELS)


# ----------------------------------- main -------------------------------------
if __name__ == "__main__":
    key = jax.random.PRNGKey(0)
    k_idx, k_par = jax.random.split(key)

    # Some indices intentionally >= VOCAB_SIZE to exercise the UNK clamp.
    input_indices = jax.random.randint(
        k_idx, (D_BATCH, N_SEQ), 0, VOCAB_SIZE + 8, dtype=jnp.int32)

    params = init_params(k_par)
    fwd = jax.jit(genia_reformer_forward)
    out = jax.block_until_ready(fwd(params, input_indices))

    assert out.shape == (D_BATCH, N_SEQ, NUM_BIO_LABELS), out.shape
    assert bool(jnp.all(jnp.isfinite(out)))
    assert bool(jnp.all((out >= 0.0) & (out <= 1.0)))   # sigmoid range
    print("KERNEL_OK")
</pallas_src>

<mosaic_0001>
module attributes {stable_mosaic.version = 11 : i64} {
  func.func @fused_kernel(%arg0: memref<16x1xi32, #tpu.memory_space<vmem>>, %arg1: memref<64x32xf32, #tpu.memory_space<vmem>>, %arg2: memref<16x32xf32, #tpu.memory_space<vmem>>, %arg3: memref<16x16xf32, #tpu.memory_space<vmem>>, %arg4: memref<2x1x32xf32, #tpu.memory_space<vmem>>, %arg5: memref<2x1x32xf32, #tpu.memory_space<vmem>>, %arg6: memref<2x32x96xf32, #tpu.memory_space<vmem>>, %arg7: memref<2x32x32xf32, #tpu.memory_space<vmem>>, %arg8: memref<2x1x32xf32, #tpu.memory_space<vmem>>, %arg9: memref<2x1x32xf32, #tpu.memory_space<vmem>>, %arg10: memref<2x32x128xf32, #tpu.memory_space<vmem>>, %arg11: memref<2x1x128xf32, #tpu.memory_space<vmem>>, %arg12: memref<2x128x32xf32, #tpu.memory_space<vmem>>, %arg13: memref<2x1x32xf32, #tpu.memory_space<vmem>>, %arg14: memref<32x16xf32, #tpu.memory_space<vmem>>, %arg15: memref<1x16xf32, #tpu.memory_space<vmem>>, %arg16: memref<16x128xf32, #tpu.memory_space<vmem>>, %arg17: memref<1x128xf32, #tpu.memory_space<vmem>>, %arg18: memref<16x128xf32, #tpu.memory_space<vmem>>) attributes {dimension_semantics = [], scalar_prefetch = 0 : i64, scratch_operands = 0 : i64, tpu.core_type = #tpu.core_type<tc>} {
    %c0 = arith.constant 0 : index
    %c0_0 = arith.constant 0 : index
    %0 = vector.load %arg0[%c0, %c0_0] : memref<16x1xi32, #tpu.memory_space<vmem>>, vector<16x1xi32>
    %c64_i32 = arith.constant 64 : i32
    %1 = vector.broadcast %c64_i32 : i32 to vector<16x1xi32>
    %2 = arith.cmpi sge, %0, %1 : vector<16x1xi32>
    %c1_i32 = arith.constant 1 : i32
    %3 = vector.broadcast %c1_i32 : i32 to vector<16x1xi32>
    %4 = arith.select %2, %3, %0 : vector<16x1xi1>, vector<16x1xi32>
    %5 = tpu.iota {dimensions = array<i32: 1>} : vector<16x64xi32>
    %6 = vector.broadcast %4 : vector<16x1xi32> to vector<16x64xi32>
    %7 = arith.cmpi eq, %6, %5 : vector<16x64xi32>
    %8 = arith.extui %7 : vector<16x64xi1> to vector<16x64xi32>
    %9 = arith.sitofp %8 : vector<16x64xi32> to vector<16x64xf32>
    %c0_1 = arith.constant 0 : index
    %c0_2 = arith.constant 0 : index
    %10 = vector.load %arg1[%c0_1, %c0_2] : memref<64x32xf32, #tpu.memory_space<vmem>>, vector<64x32xf32>
    %cst = arith.constant dense<0.000000e+00> : vector<16x32xf32>
    %11 = tpu.matmul %9, %10, %cst {dimension_numbers = #tpu.dot_dimension_numbers<[1], [0], [0], [1], [0, 0, 1, 1], [], []>} : vector<16x64xf32>, vector<64x32xf32>, vector<16x32xf32> -> vector<16x32xf32>
    %c0_3 = arith.constant 0 : index
    %c0_4 = arith.constant 0 : index
    %12 = vector.load %arg2[%c0_3, %c0_4] : memref<16x32xf32, #tpu.memory_space<vmem>>, vector<16x32xf32>
    %13 = arith.addf %11, %12 : vector<16x32xf32>
    %c0_5 = arith.constant 0 : index
    %c0_6 = arith.constant 0 : index
    %14 = vector.load %arg3[%c0_5, %c0_6] : memref<16x16xf32, #tpu.memory_space<vmem>>, vector<16x16xf32>
    %c0_7 = arith.constant 0 : index
    %c0_8 = arith.constant 0 : index
    %c0_9 = arith.constant 0 : index
    %15 = vector.load %arg4[%c0_7, %c0_8, %c0_9] : memref<2x1x32xf32, #tpu.memory_space<vmem>>, vector<1x1x32xf32>
    %16 = vector.shape_cast %15 : vector<1x1x32xf32> to vector<1x32xf32>
    %c0_10 = arith.constant 0 : index
    %c0_11 = arith.constant 0 : index
    %c0_12 = arith.constant 0 : index
    %17 = vector.load %arg5[%c0_10, %c0_11, %c0_12] : memref<2x1x32xf32, #tpu.memory_space<vmem>>, vector<1x1x32xf32>
    %18 = vector.shape_cast %17 : vector<1x1x32xf32> to vector<1x32xf32>
    %cst_13 = arith.constant dense<0.000000e+00> : vector<16xf32>
    %19 = vector.multi_reduction <add>, %13, %cst_13 [1] : vector<16x32xf32> to vector<16xf32>
    %20 = vector.shape_cast %19 : vector<16xf32> to vector<16x1xf32>
    %cst_14 = arith.constant 3.200000e+01 : f32
    %21 = vector.broadcast %cst_14 : f32 to vector<16x1xf32>
    %22 = arith.divf %20, %21 : vector<16x1xf32>
    %23 = vector.broadcast %22 : vector<16x1xf32> to vector<16x32xf32>
    %24 = arith.subf %13, %23 : vector<16x32xf32>
    %25 = arith.mulf %24, %24 : vector<16x32xf32>
    %cst_15 = arith.constant dense<0.000000e+00> : vector<16xf32>
    %26 = vector.multi_reduction <add>, %25, %cst_15 [1] : vector<16x32xf32> to vector<16xf32>
    %27 = vector.shape_cast %26 : vector<16xf32> to vector<16x1xf32>
    %cst_16 = arith.constant 3.200000e+01 : f32
    %28 = vector.broadcast %cst_16 : f32 to vector<16x1xf32>
    %29 = arith.divf %27, %28 : vector<16x1xf32>
    %30 = vector.broadcast %22 : vector<16x1xf32> to vector<16x32xf32>
    %31 = arith.subf %13, %30 : vector<16x32xf32>
    %cst_17 = arith.constant 9.99999974E-6 : f32
    %32 = vector.broadcast %cst_17 : f32 to vector<16x1xf32>
    %33 = arith.addf %29, %32 : vector<16x1xf32>
    %34 = math.rsqrt %33 : vector<16x1xf32>
    %35 = vector.broadcast %34 : vector<16x1xf32> to vector<16x32xf32>
    %36 = arith.mulf %31, %35 : vector<16x32xf32>
    %37 = vector.broadcast %16 : vector<1x32xf32> to vector<16x32xf32>
    %38 = arith.mulf %36, %37 : vector<16x32xf32>
    %39 = vector.broadcast %18 : vector<1x32xf32> to vector<16x32xf32>
    %40 = arith.addf %38, %39 : vector<16x32xf32>
    %c0_18 = arith.constant 0 : index
    %c0_19 = arith.constant 0 : index
    %c0_20 = arith.constant 0 : index
    %41 = vector.load %arg6[%c0_18, %c0_19, %c0_20] : memref<2x32x96xf32, #tpu.memory_space<vmem>>, vector<1x32x96xf32>
    %42 = vector.shape_cast %41 : vector<1x32x96xf32> to vector<32x96xf32>
    %cst_21 = arith.constant dense<0.000000e+00> : vector<16x96xf32>
    %43 = tpu.matmul %40, %42, %cst_21 {dimension_numbers = #tpu.dot_dimension_numbers<[1], [0], [0], [1], [0, 0, 1, 1], [], []>} : vector<16x32xf32>, vector<32x96xf32>, vector<16x96xf32> -> vector<16x96xf32>
    %c0_22 = arith.constant 0 : index
    %c0_23 = arith.constant 0 : index
    %c0_24 = arith.constant 0 : index
    %44 = vector.load %arg7[%c0_22, %c0_23, %c0_24] : memref<2x32x32xf32, #tpu.memory_space<vmem>>, vector<1x32x32xf32>
    %45 = vector.shape_cast %44 : vector<1x32x32xf32> to vector<32x32xf32>
    %cst_25 = arith.constant 0.000000e+00 : f32
    %46 = vector.broadcast %cst_25 : f32 to vector<16x32xf32>
    %47 = vector.extract_strided_slice %43 {offsets = [0, 0], sizes = [16, 8], strides = [1, 1]} : vector<16x96xf32> to vector<16x8xf32>
    %48 = vector.extract_strided_slice %43 {offsets = [0, 32], sizes = [16, 8], strides = [1, 1]} : vector<16x96xf32> to vector<16x8xf32>
    %49 = vector.extract_strided_slice %43 {offsets = [0, 64], sizes = [16, 8], strides = [1, 1]} : vector<16x96xf32> to vector<16x8xf32>
    %cst_26 = arith.constant dense<0.000000e+00> : vector<16x16xf32>
    %50 = tpu.matmul %47, %48, %cst_26 {dimension_numbers = #tpu.dot_dimension_numbers<[1], [1], [0], [0], [0, 0, 1, 0], [], []>} : vector<16x8xf32>, vector<16x8xf32>, vector<16x16xf32> -> vector<16x16xf32>
    %cst_27 = arith.constant 0.353553385 : f32
    %51 = vector.broadcast %cst_27 : f32 to vector<16x16xf32>
    %52 = arith.mulf %50, %51 : vector<16x16xf32>
    %53 = arith.addf %52, %14 : vector<16x16xf32>
    %cst_28 = arith.constant dense<0xFF800000> : vector<16xf32>
    %54 = vector.multi_reduction <maximumf>, %53, %cst_28 [1] : vector<16x16xf32> to vector<16xf32>
    %cst_29 = arith.constant 0xFF800000 : f32
    %55 = vector.broadcast %cst_29 : f32 to vector<16xf32>
    %56 = arith.maximumf %55, %54 : vector<16xf32>
    %57 = vector.shape_cast %56 : vector<16xf32> to vector<16x1xf32>
    %58 = vector.broadcast %57 : vector<16x1xf32> to vector<16x16xf32>
    %59 = arith.subf %53, %58 : vector<16x16xf32>
    %60 = math.exp %59 : vector<16x16xf32>
    %cst_30 = arith.constant dense<0.000000e+00> : vector<16xf32>
    %61 = vector.multi_reduction <add>, %60, %cst_30 [1] : vector<16x16xf32> to vector<16xf32>
    %62 = vector.shape_cast %61 : vector<16xf32> to vector<16x1xf32>
    %63 = vector.broadcast %62 : vector<16x1xf32> to vector<16x16xf32>
    %64 = arith.divf %60, %63 : vector<16x16xf32>
    %cst_31 = arith.constant dense<0.000000e+00> : vector<16x8xf32>
    %65 = tpu.matmul %64, %49, %cst_31 {dimension_numbers = #tpu.dot_dimension_numbers<[1], [0], [0], [1], [0, 0, 1, 1], [], []>} : vector<16x16xf32>, vector<16x8xf32>, vector<16x8xf32> -> vector<16x8xf32>
    %66 = vector.extract_strided_slice %45 {offsets = [0, 0], sizes = [8, 32], strides = [1, 1]} : vector<32x32xf32> to vector<8x32xf32>
    %cst_32 = arith.constant dense<0.000000e+00> : vector<16x32xf32>
    %67 = tpu.matmul %65, %66, %cst_32 {dimension_numbers = #tpu.dot_dimension_numbers<[1], [0], [0], [1], [0, 0, 1, 1], [], []>} : vector<16x8xf32>, vector<8x32xf32>, vector<16x32xf32> -> vector<16x32xf32>
    %68 = arith.addf %46, %67 : vector<16x32xf32>
    %69 = vector.extract_strided_slice %43 {offsets = [0, 8], sizes = [16, 8], strides = [1, 1]} : vector<16x96xf32> to vector<16x8xf32>
    %70 = vector.extract_strided_slice %43 {offsets = [0, 40], sizes = [16, 8], strides = [1, 1]} : vector<16x96xf32> to vector<16x8xf32>
    %71 = vector.extract_strided_slice %43 {offsets = [0, 72], sizes = [16, 8], strides = [1, 1]} : vector<16x96xf32> to vector<16x8xf32>
    %cst_33 = arith.constant dense<0.000000e+00> : vector<16x16xf32>
    %72 = tpu.matmul %69, %70, %cst_33 {dimension_numbers = #tpu.dot_dimension_numbers<[1], [1], [0], [0], [0, 0, 1, 0], [], []>} : vector<16x8xf32>, vector<16x8xf32>, vector<16x16xf32> -> vector<16x16xf32>
    %cst_34 = arith.constant 0.353553385 : f32
    %73 = vector.broadcast %cst_34 : f32 to vector<16x16xf32>
    %74 = arith.mulf %72, %73 : vector<16x16xf32>
    %75 = arith.addf %74, %14 : vector<16x16xf32>
    %cst_35 = arith.constant dense<0xFF800000> : vector<16xf32>
    %76 = vector.multi_reduction <maximumf>, %75, %cst_35 [1] : vector<16x16xf32> to vector<16xf32>
    %cst_36 = arith.constant 0xFF800000 : f32
    %77 = vector.broadcast %cst_36 : f32 to vector<16xf32>
    %78 = arith.maximumf %77, %76 : vector<16xf32>
    %79 = vector.shape_cast %78 : vector<16xf32> to vector<16x1xf32>
    %80 = vector.broadcast %79 : vector<16x1xf32> to vector<16x16xf32>
    %81 = arith.subf %75, %80 : vector<16x16xf32>
    %82 = math.exp %81 : vector<16x16xf32>
    %cst_37 = arith.constant dense<0.000000e+00> : vector<16xf32>
    %83 = vector.multi_reduction <add>, %82, %cst_37 [1] : vector<16x16xf32> to vector<16xf32>
    %84 = vector.shape_cast %83 : vector<16xf32> to vector<16x1xf32>
    %85 = vector.broadcast %84 : vector<16x1xf32> to vector<16x16xf32>
    %86 = arith.divf %82, %85 : vector<16x16xf32>
    %cst_38 = arith.constant dense<0.000000e+00> : vector<16x8xf32>
    %87 = tpu.matmul %86, %71, %cst_38 {dimension_numbers = #tpu.dot_dimension_numbers<[1], [0], [0], [1], [0, 0, 1, 1], [], []>} : vector<16x16xf32>, vector<16x8xf32>, vector<16x8xf32> -> vector<16x8xf32>
    %88 = vector.extract_strided_slice %45 {offsets = [8, 0], sizes = [8, 32], strides = [1, 1]} : vector<32x32xf32> to vector<8x32xf32>
    %cst_39 = arith.constant dense<0.000000e+00> : vector<16x32xf32>
    %89 = tpu.matmul %87, %88, %cst_39 {dimension_numbers = #tpu.dot_dimension_numbers<[1], [0], [0], [1], [0, 0, 1, 1], [], []>} : vector<16x8xf32>, vector<8x32xf32>, vector<16x32xf32> -> vector<16x32xf32>
    %90 = arith.addf %68, %89 : vector<16x32xf32>
    %91 = vector.extract_strided_slice %43 {offsets = [0, 16], sizes = [16, 8], strides = [1, 1]} : vector<16x96xf32> to vector<16x8xf32>
    %92 = vector.extract_strided_slice %43 {offsets = [0, 48], sizes = [16, 8], strides = [1, 1]} : vector<16x96xf32> to vector<16x8xf32>
    %93 = vector.extract_strided_slice %43 {offsets = [0, 80], sizes = [16, 8], strides = [1, 1]} : vector<16x96xf32> to vector<16x8xf32>
    %cst_40 = arith.constant dense<0.000000e+00> : vector<16x16xf32>
    %94 = tpu.matmul %91, %92, %cst_40 {dimension_numbers = #tpu.dot_dimension_numbers<[1], [1], [0], [0], [0, 0, 1, 0], [], []>} : vector<16x8xf32>, vector<16x8xf32>, vector<16x16xf32> -> vector<16x16xf32>
    %cst_41 = arith.constant 0.353553385 : f32
    %95 = vector.broadcast %cst_41 : f32 to vector<16x16xf32>
    %96 = arith.mulf %94, %95 : vector<16x16xf32>
    %97 = arith.addf %96, %14 : vector<16x16xf32>
    %cst_42 = arith.constant dense<0xFF800000> : vector<16xf32>
    %98 = vector.multi_reduction <maximumf>, %97, %cst_42 [1] : vector<16x16xf32> to vector<16xf32>
    %cst_43 = arith.constant 0xFF800000 : f32
    %99 = vector.broadcast %cst_43 : f32 to vector<16xf32>
    %100 = arith.maximumf %99, %98 : vector<16xf32>
    %101 = vector.shape_cast %100 : vector<16xf32> to vector<16x1xf32>
    %102 = vector.broadcast %101 : vector<16x1xf32> to vector<16x16xf32>
    %103 = arith.subf %97, %102 : vector<16x16xf32>
    %104 = math.exp %103 : vector<16x16xf32>
    %cst_44 = arith.constant dense<0.000000e+00> : vector<16xf32>
    %105 = vector.multi_reduction <add>, %104, %cst_44 [1] : vector<16x16xf32> to vector<16xf32>
    %106 = vector.shape_cast %105 : vector<16xf32> to vector<16x1xf32>
    %107 = vector.broadcast %106 : vector<16x1xf32> to vector<16x16xf32>
    %108 = arith.divf %104, %107 : vector<16x16xf32>
    %cst_45 = arith.constant dense<0.000000e+00> : vector<16x8xf32>
    %109 = tpu.matmul %108, %93, %cst_45 {dimension_numbers = #tpu.dot_dimension_numbers<[1], [0], [0], [1], [0, 0, 1, 1], [], []>} : vector<16x16xf32>, vector<16x8xf32>, vector<16x8xf32> -> vector<16x8xf32>
    %110 = vector.extract_strided_slice %45 {offsets = [16, 0], sizes = [8, 32], strides = [1, 1]} : vector<32x32xf32> to vector<8x32xf32>
    %cst_46 = arith.constant dense<0.000000e+00> : vector<16x32xf32>
    %111 = tpu.matmul %109, %110, %cst_46 {dimension_numbers = #tpu.dot_dimension_numbers<[1], [0], [0], [1], [0, 0, 1, 1], [], []>} : vector<16x8xf32>, vector<8x32xf32>, vector<16x32xf32> -> vector<16x32xf32>
    %112 = arith.addf %90, %111 : vector<16x32xf32>
    %113 = vector.extract_strided_slice %43 {offsets = [0, 24], sizes = [16, 8], strides = [1, 1]} : vector<16x96xf32> to vector<16x8xf32>
    %114 = vector.extract_strided_slice %43 {offsets = [0, 56], sizes = [16, 8], strides = [1, 1]} : vector<16x96xf32> to vector<16x8xf32>
    %115 = vector.extract_strided_slice %43 {offsets = [0, 88], sizes = [16, 8], strides = [1, 1]} : vector<16x96xf32> to vector<16x8xf32>
    %cst_47 = arith.constant dense<0.000000e+00> : vector<16x16xf32>
    %116 = tpu.matmul %113, %114, %cst_47 {dimension_numbers = #tpu.dot_dimension_numbers<[1], [1], [0], [0], [0, 0, 1, 0], [], []>} : vector<16x8xf32>, vector<16x8xf32>, vector<16x16xf32> -> vector<16x16xf32>
    %cst_48 = arith.constant 0.353553385 : f32
    %117 = vector.broadcast %cst_48 : f32 to vector<16x16xf32>
    %118 = arith.mulf %116, %117 : vector<16x16xf32>
    %119 = arith.addf %118, %14 : vector<16x16xf32>
    %cst_49 = arith.constant dense<0xFF800000> : vector<16xf32>
    %120 = vector.multi_reduction <maximumf>, %119, %cst_49 [1] : vector<16x16xf32> to vector<16xf32>
    %cst_50 = arith.constant 0xFF800000 : f32
    %121 = vector.broadcast %cst_50 : f32 to vector<16xf32>
    %122 = arith.maximumf %121, %120 : vector<16xf32>
    %123 = vector.shape_cast %122 : vector<16xf32> to vector<16x1xf32>
    %124 = vector.broadcast %123 : vector<16x1xf32> to vector<16x16xf32>
    %125 = arith.subf %119, %124 : vector<16x16xf32>
    %126 = math.exp %125 : vector<16x16xf32>
    %cst_51 = arith.constant dense<0.000000e+00> : vector<16xf32>
    %127 = vector.multi_reduction <add>, %126, %cst_51 [1] : vector<16x16xf32> to vector<16xf32>
    %128 = vector.shape_cast %127 : vector<16xf32> to vector<16x1xf32>
    %129 = vector.broadcast %128 : vector<16x1xf32> to vector<16x16xf32>
    %130 = arith.divf %126, %129 : vector<16x16xf32>
    %cst_52 = arith.constant dense<0.000000e+00> : vector<16x8xf32>
    %131 = tpu.matmul %130, %115, %cst_52 {dimension_numbers = #tpu.dot_dimension_numbers<[1], [0], [0], [1], [0, 0, 1, 1], [], []>} : vector<16x16xf32>, vector<16x8xf32>, vector<16x8xf32> -> vector<16x8xf32>
    %132 = vector.extract_strided_slice %45 {offsets = [24, 0], sizes = [8, 32], strides = [1, 1]} : vector<32x32xf32> to vector<8x32xf32>
    %cst_53 = arith.constant dense<0.000000e+00> : vector<16x32xf32>
    %133 = tpu.matmul %131, %132, %cst_53 {dimension_numbers = #tpu.dot_dimension_numbers<[1], [0], [0], [1], [0, 0, 1, 1], [], []>} : vector<16x8xf32>, vector<8x32xf32>, vector<16x32xf32> -> vector<16x32xf32>
    %134 = arith.addf %112, %133 : vector<16x32xf32>
    %135 = arith.addf %13, %134 : vector<16x32xf32>
    %c0_54 = arith.constant 0 : index
    %c0_55 = arith.constant 0 : index
    %c0_56 = arith.constant 0 : index
    %136 = vector.load %arg8[%c0_54, %c0_55, %c0_56] : memref<2x1x32xf32, #tpu.memory_space<vmem>>, vector<1x1x32xf32>
    %137 = vector.shape_cast %136 : vector<1x1x32xf32> to vector<1x32xf32>
    %c0_57 = arith.constant 0 : index
    %c0_58 = arith.constant 0 : index
    %c0_59 = arith.constant 0 : index
    %138 = vector.load %arg9[%c0_57, %c0_58, %c0_59] : memref<2x1x32xf32, #tpu.memory_space<vmem>>, vector<1x1x32xf32>
    %139 = vector.shape_cast %138 : vector<1x1x32xf32> to vector<1x32xf32>
    %cst_60 = arith.constant dense<0.000000e+00> : vector<16xf32>
    %140 = vector.multi_reduction <add>, %135, %cst_60 [1] : vector<16x32xf32> to vector<16xf32>
    %141 = vector.shape_cast %140 : vector<16xf32> to vector<16x1xf32>
    %cst_61 = arith.constant 3.200000e+01 : f32
    %142 = vector.broadcast %cst_61 : f32 to vector<16x1xf32>
    %143 = arith.divf %141, %142 : vector<16x1xf32>
    %144 = vector.broadcast %143 : vector<16x1xf32> to vector<16x32xf32>
    %145 = arith.subf %135, %144 : vector<16x32xf32>
    %146 = arith.mulf %145, %145 : vector<16x32xf32>
    %cst_62 = arith.constant dense<0.000000e+00> : vector<16xf32>
    %147 = vector.multi_reduction <add>, %146, %cst_62 [1] : vector<16x32xf32> to vector<16xf32>
    %148 = vector.shape_cast %147 : vector<16xf32> to vector<16x1xf32>
    %cst_63 = arith.constant 3.200000e+01 : f32
    %149 = vector.broadcast %cst_63 : f32 to vector<16x1xf32>
    %150 = arith.divf %148, %149 : vector<16x1xf32>
    %151 = vector.broadcast %143 : vector<16x1xf32> to vector<16x32xf32>
    %152 = arith.subf %135, %151 : vector<16x32xf32>
    %cst_64 = arith.constant 9.99999974E-6 : f32
    %153 = vector.broadcast %cst_64 : f32 to vector<16x1xf32>
    %154 = arith.addf %150, %153 : vector<16x1xf32>
    %155 = math.rsqrt %154 : vector<16x1xf32>
    %156 = vector.broadcast %155 : vector<16x1xf32> to vector<16x32xf32>
    %157 = arith.mulf %152, %156 : vector<16x32xf32>
    %158 = vector.broadcast %137 : vector<1x32xf32> to vector<16x32xf32>
    %159 = arith.mulf %157, %158 : vector<16x32xf32>
    %160 = vector.broadcast %139 : vector<1x32xf32> to vector<16x32xf32>
    %161 = arith.addf %159, %160 : vector<16x32xf32>
    %c0_65 = arith.constant 0 : index
    %c0_66 = arith.constant 0 : index
    %c0_67 = arith.constant 0 : index
    %162 = vector.load %arg10[%c0_65, %c0_66, %c0_67] : memref<2x32x128xf32, #tpu.memory_space<vmem>>, vector<1x32x128xf32>
    %163 = vector.shape_cast %162 : vector<1x32x128xf32> to vector<32x128xf32>
    %cst_68 = arith.constant dense<0.000000e+00> : vector<16x128xf32>
    %164 = tpu.matmul %161, %163, %cst_68 {dimension_numbers = #tpu.dot_dimension_numbers<[1], [0], [0], [1], [0, 0, 1, 1], [], []>} : vector<16x32xf32>, vector<32x128xf32>, vector<16x128xf32> -> vector<16x128xf32>
    %c0_69 = arith.constant 0 : index
    %c0_70 = arith.constant 0 : index
    %c0_71 = arith.constant 0 : index
    %165 = vector.load %arg11[%c0_69, %c0_70, %c0_71] : memref<2x1x128xf32, #tpu.memory_space<vmem>>, vector<1x1x128xf32>
    %166 = vector.shape_cast %165 : vector<1x1x128xf32> to vector<1x128xf32>
    %167 = vector.broadcast %166 : vector<1x128xf32> to vector<16x128xf32>
    %168 = arith.addf %164, %167 : vector<16x128xf32>
    %169 = arith.mulf %168, %168 : vector<16x128xf32>
    %170 = arith.mulf %168, %169 : vector<16x128xf32>
    %cst_72 = arith.constant 4.471500e-02 : f32
    %171 = vector.broadcast %cst_72 : f32 to vector<16x128xf32>
    %172 = arith.mulf %171, %170 : vector<16x128xf32>
    %173 = arith.addf %168, %172 : vector<16x128xf32>
    %cst_73 = arith.constant 0.797884583 : f32
    %174 = vector.broadcast %cst_73 : f32 to vector<16x128xf32>
    %175 = arith.mulf %174, %173 : vector<16x128xf32>
    %176 = math.tanh %175 : vector<16x128xf32>
    %cst_74 = arith.constant 1.000000e+00 : f32
    %177 = vector.broadcast %cst_74 : f32 to vector<16x128xf32>
    %178 = arith.addf %177, %176 : vector<16x128xf32>
    %cst_75 = arith.constant 5.000000e-01 : f32
    %179 = vector.broadcast %cst_75 : f32 to vector<16x128xf32>
    %180 = arith.mulf %179, %178 : vector<16x128xf32>
    %181 = arith.mulf %168, %180 : vector<16x128xf32>
    %c0_76 = arith.constant 0 : index
    %c0_77 = arith.constant 0 : index
    %c0_78 = arith.constant 0 : index
    %182 = vector.load %arg12[%c0_76, %c0_77, %c0_78] : memref<2x128x32xf32, #tpu.memory_space<vmem>>, vector<1x128x32xf32>
    %183 = vector.shape_cast %182 : vector<1x128x32xf32> to vector<128x32xf32>
    %cst_79 = arith.constant dense<0.000000e+00> : vector<16x32xf32>
    %184 = tpu.matmul %181, %183, %cst_79 {dimension_numbers = #tpu.dot_dimension_numbers<[1], [0], [0], [1], [0, 0, 1, 1], [], []>} : vector<16x128xf32>, vector<128x32xf32>, vector<16x32xf32> -> vector<16x32xf32>
    %c0_80 = arith.constant 0 : index
    %c0_81 = arith.constant 0 : index
    %c0_82 = arith.constant 0 : index
    %185 = vector.load %arg13[%c0_80, %c0_81, %c0_82] : memref<2x1x32xf32, #tpu.memory_space<vmem>>, vector<1x1x32xf32>
    %186 = vector.shape_cast %185 : vector<1x1x32xf32> to vector<1x32xf32>
    %187 = vector.broadcast %186 : vector<1x32xf32> to vector<16x32xf32>
    %188 = arith.addf %184, %187 : vector<16x32xf32>
    %189 = arith.addf %135, %188 : vector<16x32xf32>
    %c1 = arith.constant 1 : index
    %c0_83 = arith.constant 0 : index
    %c0_84 = arith.constant 0 : index
    %190 = vector.load %arg4[%c1, %c0_83, %c0_84] : memref<2x1x32xf32, #tpu.memory_space<vmem>>, vector<1x1x32xf32>
    %191 = vector.shape_cast %190 : vector<1x1x32xf32> to vector<1x32xf32>
    %c1_85 = arith.constant 1 : index
    %c0_86 = arith.constant 0 : index
    %c0_87 = arith.constant 0 : index
    %192 = vector.load %arg5[%c1_85, %c0_86, %c0_87] : memref<2x1x32xf32, #tpu.memory_space<vmem>>, vector<1x1x32xf32>
    %193 = vector.shape_cast %192 : vector<1x1x32xf32> to vector<1x32xf32>
    %cst_88 = arith.constant dense<0.000000e+00> : vector<16xf32>
    %194 = vector.multi_reduction <add>, %189, %cst_88 [1] : vector<16x32xf32> to vector<16xf32>
    %195 = vector.shape_cast %194 : vector<16xf32> to vector<16x1xf32>
    %cst_89 = arith.constant 3.200000e+01 : f32
    %196 = vector.broadcast %cst_89 : f32 to vector<16x1xf32>
    %197 = arith.divf %195, %196 : vector<16x1xf32>
    %198 = vector.broadcast %197 : vector<16x1xf32> to vector<16x32xf32>
    %199 = arith.subf %189, %198 : vector<16x32xf32>
    %200 = arith.mulf %199, %199 : vector<16x32xf32>
    %cst_90 = arith.constant dense<0.000000e+00> : vector<16xf32>
    %201 = vector.multi_reduction <add>, %200, %cst_90 [1] : vector<16x32xf32> to vector<16xf32>
    %202 = vector.shape_cast %201 : vector<16xf32> to vector<16x1xf32>
    %cst_91 = arith.constant 3.200000e+01 : f32
    %203 = vector.broadcast %cst_91 : f32 to vector<16x1xf32>
    %204 = arith.divf %202, %203 : vector<16x1xf32>
    %205 = vector.broadcast %197 : vector<16x1xf32> to vector<16x32xf32>
    %206 = arith.subf %189, %205 : vector<16x32xf32>
    %cst_92 = arith.constant 9.99999974E-6 : f32
    %207 = vector.broadcast %cst_92 : f32 to vector<16x1xf32>
    %208 = arith.addf %204, %207 : vector<16x1xf32>
    %209 = math.rsqrt %208 : vector<16x1xf32>
    %210 = vector.broadcast %209 : vector<16x1xf32> to vector<16x32xf32>
    %211 = arith.mulf %206, %210 : vector<16x32xf32>
    %212 = vector.broadcast %191 : vector<1x32xf32> to vector<16x32xf32>
    %213 = arith.mulf %211, %212 : vector<16x32xf32>
    %214 = vector.broadcast %193 : vector<1x32xf32> to vector<16x32xf32>
    %215 = arith.addf %213, %214 : vector<16x32xf32>
    %c1_93 = arith.constant 1 : index
    %c0_94 = arith.constant 0 : index
    %c0_95 = arith.constant 0 : index
    %216 = vector.load %arg6[%c1_93, %c0_94, %c0_95] : memref<2x32x96xf32, #tpu.memory_space<vmem>>, vector<1x32x96xf32>
    %217 = vector.shape_cast %216 : vector<1x32x96xf32> to vector<32x96xf32>
    %cst_96 = arith.constant dense<0.000000e+00> : vector<16x96xf32>
    %218 = tpu.matmul %215, %217, %cst_96 {dimension_numbers = #tpu.dot_dimension_numbers<[1], [0], [0], [1], [0, 0, 1, 1], [], []>} : vector<16x32xf32>, vector<32x96xf32>, vector<16x96xf32> -> vector<16x96xf32>
    %c1_97 = arith.constant 1 : index
    %c0_98 = arith.constant 0 : index
    %c0_99 = arith.constant 0 : index
    %219 = vector.load %arg7[%c1_97, %c0_98, %c0_99] : memref<2x32x32xf32, #tpu.memory_space<vmem>>, vector<1x32x32xf32>
    %220 = vector.shape_cast %219 : vector<1x32x32xf32> to vector<32x32xf32>
    %cst_100 = arith.constant 0.000000e+00 : f32
    %221 = vector.broadcast %cst_100 : f32 to vector<16x32xf32>
    %222 = vector.extract_strided_slice %218 {offsets = [0, 0], sizes = [16, 8], strides = [1, 1]} : vector<16x96xf32> to vector<16x8xf32>
    %223 = vector.extract_strided_slice %218 {offsets = [0, 32], sizes = [16, 8], strides = [1, 1]} : vector<16x96xf32> to vector<16x8xf32>
    %224 = vector.extract_strided_slice %218 {offsets = [0, 64], sizes = [16, 8], strides = [1, 1]} : vector<16x96xf32> to vector<16x8xf32>
    %cst_101 = arith.constant dense<0.000000e+00> : vector<16x16xf32>
    %225 = tpu.matmul %222, %223, %cst_101 {dimension_numbers = #tpu.dot_dimension_numbers<[1], [1], [0], [0], [0, 0, 1, 0], [], []>} : vector<16x8xf32>, vector<16x8xf32>, vector<16x16xf32> -> vector<16x16xf32>
    %cst_102 = arith.constant 0.353553385 : f32
    %226 = vector.broadcast %cst_102 : f32 to vector<16x16xf32>
    %227 = arith.mulf %225, %226 : vector<16x16xf32>
    %228 = arith.addf %227, %14 : vector<16x16xf32>
    %cst_103 = arith.constant dense<0xFF800000> : vector<16xf32>
    %229 = vector.multi_reduction <maximumf>, %228, %cst_103 [1] : vector<16x16xf32> to vector<16xf32>
    %cst_104 = arith.constant 0xFF800000 : f32
    %230 = vector.broadcast %cst_104 : f32 to vector<16xf32>
    %231 = arith.maximumf %230, %229 : vector<16xf32>
    %232 = vector.shape_cast %231 : vector<16xf32> to vector<16x1xf32>
    %233 = vector.broadcast %232 : vector<16x1xf32> to vector<16x16xf32>
    %234 = arith.subf %228, %233 : vector<16x16xf32>
    %235 = math.exp %234 : vector<16x16xf32>
    %cst_105 = arith.constant dense<0.000000e+00> : vector<16xf32>
    %236 = vector.multi_reduction <add>, %235, %cst_105 [1] : vector<16x16xf32> to vector<16xf32>
    %237 = vector.shape_cast %236 : vector<16xf32> to vector<16x1xf32>
    %238 = vector.broadcast %237 : vector<16x1xf32> to vector<16x16xf32>
    %239 = arith.divf %235, %238 : vector<16x16xf32>
    %cst_106 = arith.constant dense<0.000000e+00> : vector<16x8xf32>
    %240 = tpu.matmul %239, %224, %cst_106 {dimension_numbers = #tpu.dot_dimension_numbers<[1], [0], [0], [1], [0, 0, 1, 1], [], []>} : vector<16x16xf32>, vector<16x8xf32>, vector<16x8xf32> -> vector<16x8xf32>
    %241 = vector.extract_strided_slice %220 {offsets = [0, 0], sizes = [8, 32], strides = [1, 1]} : vector<32x32xf32> to vector<8x32xf32>
    %cst_107 = arith.constant dense<0.000000e+00> : vector<16x32xf32>
    %242 = tpu.matmul %240, %241, %cst_107 {dimension_numbers = #tpu.dot_dimension_numbers<[1], [0], [0], [1], [0, 0, 1, 1], [], []>} : vector<16x8xf32>, vector<8x32xf32>, vector<16x32xf32> -> vector<16x32xf32>
    %243 = arith.addf %221, %242 : vector<16x32xf32>
    %244 = vector.extract_strided_slice %218 {offsets = [0, 8], sizes = [16, 8], strides = [1, 1]} : vector<16x96xf32> to vector<16x8xf32>
    %245 = vector.extract_strided_slice %218 {offsets = [0, 40], sizes = [16, 8], strides = [1, 1]} : vector<16x96xf32> to vector<16x8xf32>
    %246 = vector.extract_strided_slice %218 {offsets = [0, 72], sizes = [16, 8], strides = [1, 1]} : vector<16x96xf32> to vector<16x8xf32>
    %cst_108 = arith.constant dense<0.000000e+00> : vector<16x16xf32>
    %247 = tpu.matmul %244, %245, %cst_108 {dimension_numbers = #tpu.dot_dimension_numbers<[1], [1], [0], [0], [0, 0, 1, 0], [], []>} : vector<16x8xf32>, vector<16x8xf32>, vector<16x16xf32> -> vector<16x16xf32>
    %cst_109 = arith.constant 0.353553385 : f32
    %248 = vector.broadcast %cst_109 : f32 to vector<16x16xf32>
    %249 = arith.mulf %247, %248 : vector<16x16xf32>
    %250 = arith.addf %249, %14 : vector<16x16xf32>
    %cst_110 = arith.constant dense<0xFF800000> : vector<16xf32>
    %251 = vector.multi_reduction <maximumf>, %250, %cst_110 [1] : vector<16x16xf32> to vector<16xf32>
    %cst_111 = arith.constant 0xFF800000 : f32
    %252 = vector.broadcast %cst_111 : f32 to vector<16xf32>
    %253 = arith.maximumf %252, %251 : vector<16xf32>
    %254 = vector.shape_cast %253 : vector<16xf32> to vector<16x1xf32>
    %255 = vector.broadcast %254 : vector<16x1xf32> to vector<16x16xf32>
    %256 = arith.subf %250, %255 : vector<16x16xf32>
    %257 = math.exp %256 : vector<16x16xf32>
    %cst_112 = arith.constant dense<0.000000e+00> : vector<16xf32>
    %258 = vector.multi_reduction <add>, %257, %cst_112 [1] : vector<16x16xf32> to vector<16xf32>
    %259 = vector.shape_cast %258 : vector<16xf32> to vector<16x1xf32>
    %260 = vector.broadcast %259 : vector<16x1xf32> to vector<16x16xf32>
    %261 = arith.divf %257, %260 : vector<16x16xf32>
    %cst_113 = arith.constant dense<0.000000e+00> : vector<16x8xf32>
    %262 = tpu.matmul %261, %246, %cst_113 {dimension_numbers = #tpu.dot_dimension_numbers<[1], [0], [0], [1], [0, 0, 1, 1], [], []>} : vector<16x16xf32>, vector<16x8xf32>, vector<16x8xf32> -> vector<16x8xf32>
    %263 = vector.extract_strided_slice %220 {offsets = [8, 0], sizes = [8, 32], strides = [1, 1]} : vector<32x32xf32> to vector<8x32xf32>
    %cst_114 = arith.constant dense<0.000000e+00> : vector<16x32xf32>
    %264 = tpu.matmul %262, %263, %cst_114 {dimension_numbers = #tpu.dot_dimension_numbers<[1], [0], [0], [1], [0, 0, 1, 1], [], []>} : vector<16x8xf32>, vector<8x32xf32>, vector<16x32xf32> -> vector<16x32xf32>
    %265 = arith.addf %243, %264 : vector<16x32xf32>
    %266 = vector.extract_strided_slice %218 {offsets = [0, 16], sizes = [16, 8], strides = [1, 1]} : vector<16x96xf32> to vector<16x8xf32>
    %267 = vector.extract_strided_slice %218 {offsets = [0, 48], sizes = [16, 8], strides = [1, 1]} : vector<16x96xf32> to vector<16x8xf32>
    %268 = vector.extract_strided_slice %218 {offsets = [0, 80], sizes = [16, 8], strides = [1, 1]} : vector<16x96xf32> to vector<16x8xf32>
    %cst_115 = arith.constant dense<0.000000e+00> : vector<16x16xf32>
    %269 = tpu.matmul %266, %267, %cst_115 {dimension_numbers = #tpu.dot_dimension_numbers<[1], [1], [0], [0], [0, 0, 1, 0], [], []>} : vector<16x8xf32>, vector<16x8xf32>, vector<16x16xf32> -> vector<16x16xf32>
    %cst_116 = arith.constant 0.353553385 : f32
    %270 = vector.broadcast %cst_116 : f32 to vector<16x16xf32>
    %271 = arith.mulf %269, %270 : vector<16x16xf32>
    %272 = arith.addf %271, %14 : vector<16x16xf32>
    %cst_117 = arith.constant dense<0xFF800000> : vector<16xf32>
    %273 = vector.multi_reduction <maximumf>, %272, %cst_117 [1] : vector<16x16xf32> to vector<16xf32>
    %cst_118 = arith.constant 0xFF800000 : f32
    %274 = vector.broadcast %cst_118 : f32 to vector<16xf32>
    %275 = arith.maximumf %274, %273 : vector<16xf32>
    %276 = vector.shape_cast %275 : vector<16xf32> to vector<16x1xf32>
    %277 = vector.broadcast %276 : vector<16x1xf32> to vector<16x16xf32>
    %278 = arith.subf %272, %277 : vector<16x16xf32>
    %279 = math.exp %278 : vector<16x16xf32>
    %cst_119 = arith.constant dense<0.000000e+00> : vector<16xf32>
    %280 = vector.multi_reduction <add>, %279, %cst_119 [1] : vector<16x16xf32> to vector<16xf32>
    %281 = vector.shape_cast %280 : vector<16xf32> to vector<16x1xf32>
    %282 = vector.broadcast %281 : vector<16x1xf32> to vector<16x16xf32>
    %283 = arith.divf %279, %282 : vector<16x16xf32>
    %cst_120 = arith.constant dense<0.000000e+00> : vector<16x8xf32>
    %284 = tpu.matmul %283, %268, %cst_120 {dimension_numbers = #tpu.dot_dimension_numbers<[1], [0], [0], [1], [0, 0, 1, 1], [], []>} : vector<16x16xf32>, vector<16x8xf32>, vector<16x8xf32> -> vector<16x8xf32>
    %285 = vector.extract_strided_slice %220 {offsets = [16, 0], sizes = [8, 32], strides = [1, 1]} : vector<32x32xf32> to vector<8x32xf32>
    %cst_121 = arith.constant dense<0.000000e+00> : vector<16x32xf32>
    %286 = tpu.matmul %284, %285, %cst_121 {dimension_numbers = #tpu.dot_dimension_numbers<[1], [0], [0], [1], [0, 0, 1, 1], [], []>} : vector<16x8xf32>, vector<8x32xf32>, vector<16x32xf32> -> vector<16x32xf32>
    %287 = arith.addf %265, %286 : vector<16x32xf32>
    %288 = vector.extract_strided_slice %218 {offsets = [0, 24], sizes = [16, 8], strides = [1, 1]} : vector<16x96xf32> to vector<16x8xf32>
    %289 = vector.extract_strided_slice %218 {offsets = [0, 56], sizes = [16, 8], strides = [1, 1]} : vector<16x96xf32> to vector<16x8xf32>
    %290 = vector.extract_strided_slice %218 {offsets = [0, 88], sizes = [16, 8], strides = [1, 1]} : vector<16x96xf32> to vector<16x8xf32>
    %cst_122 = arith.constant dense<0.000000e+00> : vector<16x16xf32>
    %291 = tpu.matmul %288, %289, %cst_122 {dimension_numbers = #tpu.dot_dimension_numbers<[1], [1], [0], [0], [0, 0, 1, 0], [], []>} : vector<16x8xf32>, vector<16x8xf32>, vector<16x16xf32> -> vector<16x16xf32>
    %cst_123 = arith.constant 0.353553385 : f32
    %292 = vector.broadcast %cst_123 : f32 to vector<16x16xf32>
    %293 = arith.mulf %291, %292 : vector<16x16xf32>
    %294 = arith.addf %293, %14 : vector<16x16xf32>
    %cst_124 = arith.constant dense<0xFF800000> : vector<16xf32>
    %295 = vector.multi_reduction <maximumf>, %294, %cst_124 [1] : vector<16x16xf32> to vector<16xf32>
    %cst_125 = arith.constant 0xFF800000 : f32
    %296 = vector.broadcast %cst_125 : f32 to vector<16xf32>
    %297 = arith.maximumf %296, %295 : vector<16xf32>
    %298 = vector.shape_cast %297 : vector<16xf32> to vector<16x1xf32>
    %299 = vector.broadcast %298 : vector<16x1xf32> to vector<16x16xf32>
    %300 = arith.subf %294, %299 : vector<16x16xf32>
    %301 = math.exp %300 : vector<16x16xf32>
    %cst_126 = arith.constant dense<0.000000e+00> : vector<16xf32>
    %302 = vector.multi_reduction <add>, %301, %cst_126 [1] : vector<16x16xf32> to vector<16xf32>
    %303 = vector.shape_cast %302 : vector<16xf32> to vector<16x1xf32>
    %304 = vector.broadcast %303 : vector<16x1xf32> to vector<16x16xf32>
    %305 = arith.divf %301, %304 : vector<16x16xf32>
    %cst_127 = arith.constant dense<0.000000e+00> : vector<16x8xf32>
    %306 = tpu.matmul %305, %290, %cst_127 {dimension_numbers = #tpu.dot_dimension_numbers<[1], [0], [0], [1], [0, 0, 1, 1], [], []>} : vector<16x16xf32>, vector<16x8xf32>, vector<16x8xf32> -> vector<16x8xf32>
    %307 = vector.extract_strided_slice %220 {offsets = [24, 0], sizes = [8, 32], strides = [1, 1]} : vector<32x32xf32> to vector<8x32xf32>
    %cst_128 = arith.constant dense<0.000000e+00> : vector<16x32xf32>
    %308 = tpu.matmul %306, %307, %cst_128 {dimension_numbers = #tpu.dot_dimension_numbers<[1], [0], [0], [1], [0, 0, 1, 1], [], []>} : vector<16x8xf32>, vector<8x32xf32>, vector<16x32xf32> -> vector<16x32xf32>
    %309 = arith.addf %287, %308 : vector<16x32xf32>
    %310 = arith.addf %189, %309 : vector<16x32xf32>
    %c1_129 = arith.constant 1 : index
    %c0_130 = arith.constant 0 : index
    %c0_131 = arith.constant 0 : index
    %311 = vector.load %arg8[%c1_129, %c0_130, %c0_131] : memref<2x1x32xf32, #tpu.memory_space<vmem>>, vector<1x1x32xf32>
    %312 = vector.shape_cast %311 : vector<1x1x32xf32> to vector<1x32xf32>
    %c1_132 = arith.constant 1 : index
    %c0_133 = arith.constant 0 : index
    %c0_134 = arith.constant 0 : index
    %313 = vector.load %arg9[%c1_132, %c0_133, %c0_134] : memref<2x1x32xf32, #tpu.memory_space<vmem>>, vector<1x1x32xf32>
    %314 = vector.shape_cast %313 : vector<1x1x32xf32> to vector<1x32xf32>
    %cst_135 = arith.constant dense<0.000000e+00> : vector<16xf32>
    %315 = vector.multi_reduction <add>, %310, %cst_135 [1] : vector<16x32xf32> to vector<16xf32>
    %316 = vector.shape_cast %315 : vector<16xf32> to vector<16x1xf32>
    %cst_136 = arith.constant 3.200000e+01 : f32
    %317 = vector.broadcast %cst_136 : f32 to vector<16x1xf32>
    %318 = arith.divf %316, %317 : vector<16x1xf32>
    %319 = vector.broadcast %318 : vector<16x1xf32> to vector<16x32xf32>
    %320 = arith.subf %310, %319 : vector<16x32xf32>
    %321 = arith.mulf %320, %320 : vector<16x32xf32>
    %cst_137 = arith.constant dense<0.000000e+00> : vector<16xf32>
    %322 = vector.multi_reduction <add>, %321, %cst_137 [1] : vector<16x32xf32> to vector<16xf32>
    %323 = vector.shape_cast %322 : vector<16xf32> to vector<16x1xf32>
    %cst_138 = arith.constant 3.200000e+01 : f32
    %324 = vector.broadcast %cst_138 : f32 to vector<16x1xf32>
    %325 = arith.divf %323, %324 : vector<16x1xf32>
    %326 = vector.broadcast %318 : vector<16x1xf32> to vector<16x32xf32>
    %327 = arith.subf %310, %326 : vector<16x32xf32>
    %cst_139 = arith.constant 9.99999974E-6 : f32
    %328 = vector.broadcast %cst_139 : f32 to vector<16x1xf32>
    %329 = arith.addf %325, %328 : vector<16x1xf32>
    %330 = math.rsqrt %329 : vector<16x1xf32>
    %331 = vector.broadcast %330 : vector<16x1xf32> to vector<16x32xf32>
    %332 = arith.mulf %327, %331 : vector<16x32xf32>
    %333 = vector.broadcast %312 : vector<1x32xf32> to vector<16x32xf32>
    %334 = arith.mulf %332, %333 : vector<16x32xf32>
    %335 = vector.broadcast %314 : vector<1x32xf32> to vector<16x32xf32>
    %336 = arith.addf %334, %335 : vector<16x32xf32>
    %c1_140 = arith.constant 1 : index
    %c0_141 = arith.constant 0 : index
    %c0_142 = arith.constant 0 : index
    %337 = vector.load %arg10[%c1_140, %c0_141, %c0_142] : memref<2x32x128xf32, #tpu.memory_space<vmem>>, vector<1x32x128xf32>
    %338 = vector.shape_cast %337 : vector<1x32x128xf32> to vector<32x128xf32>
    %cst_143 = arith.constant dense<0.000000e+00> : vector<16x128xf32>
    %339 = tpu.matmul %336, %338, %cst_143 {dimension_numbers = #tpu.dot_dimension_numbers<[1], [0], [0], [1], [0, 0, 1, 1], [], []>} : vector<16x32xf32>, vector<32x128xf32>, vector<16x128xf32> -> vector<16x128xf32>
    %c1_144 = arith.constant 1 : index
    %c0_145 = arith.constant 0 : index
    %c0_146 = arith.constant 0 : index
    %340 = vector.load %arg11[%c1_144, %c0_145, %c0_146] : memref<2x1x128xf32, #tpu.memory_space<vmem>>, vector<1x1x128xf32>
    %341 = vector.shape_cast %340 : vector<1x1x128xf32> to vector<1x128xf32>
    %342 = vector.broadcast %341 : vector<1x128xf32> to vector<16x128xf32>
    %343 = arith.addf %339, %342 : vector<16x128xf32>
    %344 = arith.mulf %343, %343 : vector<16x128xf32>
    %345 = arith.mulf %343, %344 : vector<16x128xf32>
    %cst_147 = arith.constant 4.471500e-02 : f32
    %346 = vector.broadcast %cst_147 : f32 to vector<16x128xf32>
    %347 = arith.mulf %346, %345 : vector<16x128xf32>
    %348 = arith.addf %343, %347 : vector<16x128xf32>
    %cst_148 = arith.constant 0.797884583 : f32
    %349 = vector.broadcast %cst_148 : f32 to vector<16x128xf32>
    %350 = arith.mulf %349, %348 : vector<16x128xf32>
    %351 = math.tanh %350 : vector<16x128xf32>
    %cst_149 = arith.constant 1.000000e+00 : f32
    %352 = vector.broadcast %cst_149 : f32 to vector<16x128xf32>
    %353 = arith.addf %352, %351 : vector<16x128xf32>
    %cst_150 = arith.constant 5.000000e-01 : f32
    %354 = vector.broadcast %cst_150 : f32 to vector<16x128xf32>
    %355 = arith.mulf %354, %353 : vector<16x128xf32>
    %356 = arith.mulf %343, %355 : vector<16x128xf32>
    %c1_151 = arith.constant 1 : index
    %c0_152 = arith.constant 0 : index
    %c0_153 = arith.constant 0 : index
    %357 = vector.load %arg12[%c1_151, %c0_152, %c0_153] : memref<2x128x32xf32, #tpu.memory_space<vmem>>, vector<1x128x32xf32>
    %358 = vector.shape_cast %357 : vector<1x128x32xf32> to vector<128x32xf32>
    %cst_154 = arith.constant dense<0.000000e+00> : vector<16x32xf32>
    %359 = tpu.matmul %356, %358, %cst_154 {dimension_numbers = #tpu.dot_dimension_numbers<[1], [0], [0], [1], [0, 0, 1, 1], [], []>} : vector<16x128xf32>, vector<128x32xf32>, vector<16x32xf32> -> vector<16x32xf32>
    %c1_155 = arith.constant 1 : index
    %c0_156 = arith.constant 0 : index
    %c0_157 = arith.constant 0 : index
    %360 = vector.load %arg13[%c1_155, %c0_156, %c0_157] : memref<2x1x32xf32, #tpu.memory_space<vmem>>, vector<1x1x32xf32>
    %361 = vector.shape_cast %360 : vector<1x1x32xf32> to vector<1x32xf32>
    %362 = vector.broadcast %361 : vector<1x32xf32> to vector<16x32xf32>
    %363 = arith.addf %359, %362 : vector<16x32xf32>
    %364 = arith.addf %310, %363 : vector<16x32xf32>
    %c0_158 = arith.constant 0 : index
    %c0_159 = arith.constant 0 : index
    %365 = vector.load %arg14[%c0_158, %c0_159] : memref<32x16xf32, #tpu.memory_space<vmem>>, vector<32x16xf32>
    %cst_160 = arith.constant dense<0.000000e+00> : vector<16x16xf32>
    %366 = tpu.matmul %364, %365, %cst_160 {dimension_numbers = #tpu.dot_dimension_numbers<[1], [0], [0], [1], [0, 0, 1, 1], [], []>} : vector<16x32xf32>, vector<32x16xf32>, vector<16x16xf32> -> vector<16x16xf32>
    %c0_161 = arith.constant 0 : index
    %c0_162 = arith.constant 0 : index
    %367 = vector.load %arg15[%c0_161, %c0_162] : memref<1x16xf32, #tpu.memory_space<vmem>>, vector<1x16xf32>
    %368 = vector.broadcast %367 : vector<1x16xf32> to vector<16x16xf32>
    %369 = arith.addf %366, %368 : vector<16x16xf32>
    %cst_163 = arith.constant 0.000000e+00 : f32
    %370 = vector.broadcast %cst_163 : f32 to vector<16x16xf32>
    %371 = arith.maximumf %369, %370 : vector<16x16xf32>
    %c0_164 = arith.constant 0 : index
    %c0_165 = arith.constant 0 : index
    %372 = vector.load %arg16[%c0_164, %c0_165] : memref<16x128xf32, #tpu.memory_space<vmem>>, vector<16x128xf32>
    %cst_166 = arith.constant dense<0.000000e+00> : vector<16x128xf32>
    %373 = tpu.matmul %371, %372, %cst_166 {dimension_numbers = #tpu.dot_dimension_numbers<[1], [0], [0], [1], [0, 0, 1, 1], [], []>} : vector<16x16xf32>, vector<16x128xf32>, vector<16x128xf32> -> vector<16x128xf32>
    %c0_167 = arith.constant 0 : index
    %c0_168 = arith.constant 0 : index
    %374 = vector.load %arg17[%c0_167, %c0_168] : memref<1x128xf32, #tpu.memory_space<vmem>>, vector<1x128xf32>
    %375 = vector.broadcast %374 : vector<1x128xf32> to vector<16x128xf32>
    %376 = arith.addf %373, %375 : vector<16x128xf32>
    %cst_169 = arith.constant 0.000000e+00 : f32
    %377 = vector.broadcast %cst_169 : f32 to vector<16x128xf32>
    %378 = arith.maximumf %376, %377 : vector<16x128xf32>
    %379 = arith.negf %378 : vector<16x128xf32>
    %380 = math.exp %379 : vector<16x128xf32>
    %cst_170 = arith.constant 1.000000e+00 : f32
    %381 = vector.broadcast %cst_170 : f32 to vector<16x128xf32>
    %382 = arith.addf %381, %380 : vector<16x128xf32>
    %383 = arith.divf %381, %382 : vector<16x128xf32>
    %c0_171 = arith.constant 0 : index
    %c0_172 = arith.constant 0 : index
    %384 = vector.load %arg18[%c0_171, %c0_172] : memref<16x128xf32, #tpu.memory_space<vmem>>, vector<16x128xf32>
    tpu.vector_store %arg18[%c0_171, %c0_172], %383 {strides = array<i32>} : memref<16x128xf32, #tpu.memory_space<vmem>>, vector<16x128xf32>,
    return
  }
}

</mosaic_0001>

<bundles_post_ra>
// kernel: eq.8
= control target key start
LH: loop header
LB: loop body
LE: loop exit
PB: predicated region body
PF: predicated region fallthrough
CT: control target
= control target key end

     0   :  { %vm8_vm0 = vcmask 64512   ;;  %vm14_vm1 = vcmask 130112   ;;  %s42_s0 = inlined_call_operand.vmem [shape: s32[2,8], index: 0, kind: input, shape index: {}]   ;;  %s43_s1 = inlined_call_operand.vmem [shape: s32[16], index: 1, kind: output, shape index: {}]  }
   0x1   :  { %v5_v0 = vld [vmem:[%s42_s0] sm:$0x3]  ;;  %s25_s0 = smov 8  }
   0x2   :  { %6 = vst [vmem:[#allocation1] sm:$0x3] %v5_v0 }
   0x9   :  { %v11_v1 = vld [vmem:[#allocation1 + $0x1] sm:$0x1]   ;;  %v7_v2 = vld [vmem:[#allocation1] sm:$0x1]  }
   0xa   :  { %12 = vrot.lane.b32.xlu0 %v11_v1, %s25_s0  ;;  %9 = vst.msk [vmem:[#allocation0] sm:$0x1] %vm8_vm0, %v7_v2  }
  0x7c   :  { %v13_v3 = vpop.permute.xlu0 %12  }
  0x7d   :  { %15 = vst.msk [vmem:[#allocation0] sm:$0x1] %vm14_vm1, %v13_v3  }
  0x84   :  { %v20_v4 = vld [vmem:[#allocation0] sm:$0x1] }
  0x85   :  { %23 = vst [vmem:[%s43_s1] sm:$0x1] %v20_v4 }

// kernel: genia_reformer_forward.1
= control target key start
LH: loop header
LB: loop body
LE: loop exit
PB: predicated region body
PF: predicated region fallthrough
CT: control target
= control target key end

     0   :  { %v4166_v0 = vmov 0   ;;  %v65_v13 = vlaneseq  ;;  %vm89_vm2 = vcmask 523264   ;;  %v4167_v16 = vmov 0.0   ;;  %s4170_s23 = smov 88   ;;  %s4171_s28 = smov 64   ;;  %s4864_s0 = inlined_call_operand.vmem [shape: s32[16,1], index: 0, kind: input, shape index: {}]   ;;  %s4865_s1 = inlined_call_operand.vmem [shape: f32[64,32], index: 1, kind: input, shape index: {}]   ;;  %s4866_s2 = inlined_call_operand.vmem [shape: f32[16,32], index: 2, kind: input, shape index: {}]   ;;  %s4867_s6 = inlined_call_operand.vmem [shape: f32[2,32,96], index: 6, kind: input, shape index: {}]   ;;  %s4868_s4 = inlined_call_operand.vmem [shape: f32[2,1,32], index: 4, kind: input, shape index: {}]   ;;  %s4869_s5 = inlined_call_operand.vmem [shape: f32[2,1,32], index: 5, kind: input, shape index: {}]   ;;  %s4870_s3 = inlined_call_operand.vmem [shape: f32[16,16], index: 3, kind: input, shape index: {}]   ;;  %s4871_s7 = inlined_call_operand.vmem [shape: f32[2,32,32], index: 7, kind: input, shape index: {}]   ;;  %s4872_s10 = inlined_call_operand.vmem [shape: f32[2,32,128], index: 10, kind: input, shape index: {}]   ;;  %s4873_s8 = inlined_call_operand.vmem [shape: f32[2,1,32], index: 8, kind: input, shape index: {}]   ;;  %s4874_s9 = inlined_call_operand.vmem [shape: f32[2,1,32], index: 9, kind: input, shape index: {}]   ;;  %s4875_s12 = inlined_call_operand.vmem [shape: f32[2,128,32], index: 12, kind: input, shape index: {}]   ;;  %s4876_s11 = inlined_call_operand.vmem [shape: f32[2,1,128], index: 11, kind: input, shape index: {}]   ;;  %s4877_s13 = inlined_call_operand.vmem [shape: f32[2,1,32], index: 13, kind: input, shape index: {}]   ;;  %s4878_s14 = inlined_call_operand.vmem [shape: f32[32,16], index: 14, kind: input, shape index: {}]   ;;  %s4879_s16 = inlined_call_operand.vmem [shape: f32[16,128], index: 16, kind: input, shape index: {}]   ;;  %s4880_s15 = inlined_call_operand.vmem [shape: f32[1,16], index: 15, kind: input, shape index: {}]   ;;  %s4881_s17 = inlined_call_operand.vmem [shape: f32[1,128], index: 17, kind: input, shape index: {}]   ;;  %s4882_s18 = inlined_call_operand.vmem [shape: f32[16,128], index: 18, kind: output, shape index: {}]  }
   0x1   :  { %4894 = sst [smem:[#allocation2_spill]] %s4864_s0  ;;  %4067 = vset.pattern.permute.xlu0 %v4166_v0  ;;  %vm175_vm5 = vcmask 261120   ;;  %v222_v38 = vld [vmem:[%s4867_s6 + $0x18] sm:$0xff]  ;;  %v221_v39 = vld [vmem:[%s4867_s6 + $0x10] sm:$0xff]  ;;  %v220_v40 = vld [vmem:[%s4867_s6 + $0x8] sm:$0xff]  ;;  %vm314_vm6 = vcmask 64512  }
   0x2   :  { %4895 = sst [smem:[#allocation3_spill]] %s4865_s1  ;;  %v66_v14 = vand.u32 127, %v65_v13  ;;  %v219_v41 = vld [vmem:[%s4867_s6] sm:$0xff]  ;;  %vm402_vm7 = vcmask 130048   ;;  %s4173_s30 = smov 80  }
   0x3   :  { %4896 = sst [smem:[#allocation4_spill]] %s4866_s2  ;;  %v3457_v49 = vld [vmem:[%s4868_s4] ss:$0 sm:$0xff]  ;;  %s4169_s2 = smov 120  }
   0x4   :  { %s4897_s29 = sld [smem:[#allocation2_spill]]  ;;  %v3458_v51 = vld [vmem:[%s4869_s5] ss:$0 sm:$0xff]  ;;  %s4174_s0 = smov 112  }
   0x5   :  { %s4898_s20 = sld [smem:[#allocation3_spill]]  ;;  %s4892_s19 = smov 72  }
   0x6   :  { %s4890_s1 = smov 104   ;;  %s4888_s26 = smov 48  }
   0x7   :  { %s4886_s27 = smov 40   ;;  %s4902_s21 = smov 48  }
   0xa   :  { %v59_v1 = vld [vmem:[%s4897_s29] sm:$0xff]  ;;  %v60_v2 = vld [vmem:[%s4897_s29 + $0x8] sm:$0xff]  ;;  %s4172_s29 = smov 56  }
   0xb   :  { %v86_v3 = vld [vmem:[%s4898_s20 + $0x38] sm:$0xff]  ;;  %vm61_vm0 = vcmp.ge.s32.totalorder %v59_v1, 64  ;;  %vm62_vm1 = vcmp.ge.s32.totalorder %v60_v2, 64  ;;  %v85_v4 = vld [vmem:[%s4898_s20 + $0x30] sm:$0xff]  ;;  %v84_v6 = vld [vmem:[%s4898_s20 + $0x28] sm:$0xff] }
   0xc   :  { %3751 = vmatprep.subr.mxu0 %v86_v3  ;;  %v63_v5 = vsel %vm61_vm0, 1, %v59_v1  ;;  %v64_v7 = vsel %vm62_vm1, 1, %v60_v2  ;;  %v83_v8 = vld [vmem:[%s4898_s20 + $0x20] sm:$0xff]  ;;  %v82_v9 = vld [vmem:[%s4898_s20 + $0x18] sm:$0xff]  ;;  %v81_v10 = vld [vmem:[%s4898_s20 + $0x10] sm:$0xff] }
   0xd   :  { %3752 = vmatpush3.msra.mxu0 %v86_v3  ;;  %68 = vperm.xlu0 %4067, %v63_v5   ;;  %v80_v11 = vld [vmem:[%s4898_s20 + $0x8] sm:$0xff]  ;;  %v79_v12 = vld [vmem:[%s4898_s20] sm:$0xff]  ;;  %s4899_s20 = sld [smem:[#allocation4_spill]] }
   0xe   :  { %3753 = vmatprep.subr.mxu0 %v85_v4  ;;  %v4375_v3 = vld [vmem:[%s4870_s3 + $0x8] sm:$0xff] }
   0xf   :  { %3754 = vmatpush3.msra.mxu0 %v85_v4 }
  0x10   :  { %3755 = vmatprep.subr.mxu0 %v84_v6 }
  0x11   :  { %3756 = vmatpush3.msra.mxu0 %v84_v6  ;;  %71 = vperm.xlu0 %4067, %v64_v7   ;;  %v4380_v6 = vld [vmem:[%s4870_s3] sm:$0xff] }
  0x12   :  { %3757 = vmatprep.subr.mxu0 %v83_v8 }
  0x13   :  { %3758 = vmatpush3.msra.mxu0 %v83_v8  ;;  %v87_v21 = vld [vmem:[%s4899_s20] sm:$0xff]  ;;  %v88_v22 = vld [vmem:[%s4899_s20 + $0x8] sm:$0xff]  ;;  %s4168_s20 = smov 96  }
  0x14   :  { %3759 = vmatprep.subr.mxu0 %v82_v9 }
  0x15   :  { %3760 = vmatpush3.msra.mxu0 %v82_v9 }
  0x16   :  { %3761 = vmatprep.subr.mxu0 %v81_v10 }
  0x17   :  { %3762 = vmatpush3.msra.mxu0 %v81_v10 }
  0x18   :  { %3763 = vmatprep.subr.mxu0 %v80_v11 }
  0x19   :  { %3764 = vmatpush3.msra.mxu0 %v80_v11 }
  0x1a   :  { %3765 = vmatprep.subr.mxu0 %v79_v12 }
  0x1b   :  { %3766 = vmatpush3.msra.mxu0 %v79_v12 }
  0x1c   :  { %3770 = vmatprep.subr.mxu0 %v222_v38 }
  0x88   :  { %v69_v15 = vpop.permute.xlu0 %68 }
  0x89   :  { %vm73_vm3 = vcmp.eq.s32.totalorder %v69_v15, %v66_v14 }
  0x8a   :  { %v3453_v17 = vsel %vm73_vm3, 1.0, %v4167_v16 }
  0x8b   :  { %3767 = vmatprep.mubr.msk.f32.mxu0 %vm89_vm2, %v3453_v17 }
  0x8c   :  { %v72_v18 = vpop.permute.xlu0 %71 }
  0x8d   :  { %vm74_vm4 = vcmp.eq.s32.totalorder %v72_v18, %v66_v14 }
  0x8e   :  { %v3454_v19 = vsel %vm74_vm4, 1.0, %v4167_v16 }
  0x8f   :  { %3768 = vmatmul.mubr.msk.f32.vlgmr.msra.gmra.mxu0 %vm89_vm2, %v3454_v19 }
  0x90   :  { %3771 = vmatpush3.msra.mxu0 %v222_v38 }
  0x91   :  { %3772 = vmatprep.subr.mxu0 %v221_v39 }
  0x92   :  { %3773 = vmatpush3.msra.mxu0 %v221_v39 }
  0x93   :  { %3774 = vmatprep.subr.mxu0 %v220_v40 }
  0x94   :  { %3775 = vmatpush3.msra.mxu0 %v220_v40 }
  0x95   :  { %3776 = vmatprep.subr.mxu0 %v219_v41 }
  0x96   :  { %3777 = vmatpush3.msra.mxu0 %v219_v41 }
 0x14f   :  { %v3769_v20 = vpop.f32.mrf.mxu0 }
 0x150   :  { %v4312_v25 = vadd.f32 %v3769_v20, %v88_v22 }
 0x151   :  { %v162_v23 = vpop.f32.mrf.mxu0 }
 0x152   :  { %v4310_v24 = vadd.f32 %v162_v23, %v87_v21  ;;  %v179_v27 = vsel %vm175_vm5, %v4312_v25, 0.0 }
 0x154   :  { %v176_v26 = vsel %vm175_vm5, %v4310_v24, 0.0 }
 0x155   :  { %177 = vadd.xlane.f32.xlu1 %v176_v26 }
 0x159   :  { %180 = vadd.xlane.f32.xlu1 %v179_v27 }
 0x1de   :  { %v178_v28 = vpop.xlane.xlu1 %177 }
 0x1df   :  { %v183_v29 = vmul.f32 0.03125, %v178_v28 }
 0x1e1   :  { %v185_v30 = vsub.f32 %v4310_v24, %v183_v29 }
 0x1e2   :  { %v181_v31 = vpop.xlane.xlu1 %180 }
 0x1e3   :  { %v184_v32 = vmul.f32 0.03125, %v181_v31  ;;  %v187_v33 = vmul.f32 %v185_v30, %v185_v30 }
 0x1e5   :  { %v186_v34 = vsub.f32 %v4312_v25, %v184_v32  ;;  %v189_v35 = vsel %vm175_vm5, %v187_v33, 0.0 }
 0x1e6   :  { %190 = vadd.xlane.f32.xlu0 %v189_v35 }
 0x1e7   :  { %v188_v36 = vmul.f32 %v186_v34, %v186_v34 }
 0x1e9   :  { %v192_v37 = vsel %vm175_vm5, %v188_v36, 0.0 }
 0x1ea   :  { %193 = vadd.xlane.f32.xlu1 %v192_v37 }
 0x26f   :  { %v191_v42 = vpop.xlane.xlu0 %190 }
 0x270   :  { %v195_v43 = vmul.f32 0.03125, %v191_v42 }
 0x272   :  { %v197_v44 = vadd.f32 1e-05, %v195_v43 }
 0x273   :  { %v194_v45 = vpop.xlane.xlu1 %193 }
 0x274   :  { %4068 = vrsqrt.f32 %v197_v44  ;;  %v196_v46 = vmul.f32 0.03125, %v194_v45 }
 0x276   :  { %v198_v47 = vadd.f32 1e-05, %v196_v46 }
 0x278   :  { %4070 = vrsqrt.f32 %v198_v47 }
 0x281   :  { %v4069_v48 = vpop.eup %4068 }
 0x282   :  { %v201_v50 = vmul.f32 %v4069_v48, %v185_v30 }
 0x284   :  { %v209_v52 = vmul.f32 %v3457_v49, %v201_v50 }
 0x285   :  { %v4071_v53 = vpop.eup %4070 }
 0x286   :  { %v202_v54 = vmul.f32 %v4071_v53, %v186_v34  ;;  %v217_v55 = vadd.f32 %v3458_v51, %v209_v52 }
 0x288   :  { %v210_v56 = vmul.f32 %v3457_v49, %v202_v54  ;;  %3778 = vmatprep.mubr.msk.f32.mxu0 %vm175_vm5, %v217_v55  ;;  %v305_v54 = vld [vmem:[%s4871_s7 + $0x8] sm:$0xff] }
 0x28a   :  { %v218_v57 = vadd.f32 %v3458_v51, %v210_v56 }
 0x28c   :  { %3779 = vmatmul.mubr.msk.f32.vlgmr.msra.gmra.mxu0 %vm175_vm5, %v218_v57 }
 0x34c   :  { %v4342_v58 = vpop.f32.mrf.mxu0 }
 0x34d   :  { %312 = vrot.lane.b32.xlu1 %v4342_v58, %s4168_s20 }
 0x34e   :  { %v4346_v59 = vpop.f32.mrf.mxu0 }
 0x34f   :  { %512 = vrot.lane.b32.xlu0 %v4346_v59, %s4169_s2  ;;  %3785 = vmatprep.mubr.msk.f32.mxu1 %vm314_vm6, %v4346_v59 }
 0x351   :  { %310 = vrot.lane.b32.xlu1 %v4346_v59, %s4168_s20 }
 0x355   :  { %518 = vrot.lane.b32.xlu1 %v4342_v58, %s4170_s23 }
 0x359   :  { %516 = vrot.lane.b32.xlu1 %v4346_v59, %s4170_s23 }
 0x35d   :  { %514 = vrot.lane.b32.xlu1 %v4342_v58, %s4169_s2 }
 0x3bf   :  { %v313_v60 = vpop.permute.xlu1 %312 }
 0x3c0   :  { %3781 = vmatprep.subr.msk.mxu1 %vm314_vm6, %v313_v60 }
 0x3c1   :  { %3782 = vmatpush3.xpose.msk.msra.mxu1 %vm314_vm6, %v313_v60  ;;  %v513_v63 = vpop.permute.xlu0 %512 }
 0x3c3   :  { %v311_v61 = vpop.permute.xlu1 %310 }
 0x3c4   :  { %3783 = vmatprep.subr.msk.mxu1 %vm314_vm6, %v311_v61 }
 0x3c5   :  { %3784 = vmatpush3.xpose.msk.msra.mxu1 %vm314_vm6, %v311_v61 }
 0x3c7   :  { %v519_v62 = vpop.permute.xlu1 %518 }
 0x3c8   :  { %3786 = vmatmul.mubr.msk.f32.vlgmr.msra.gmra.mxu1 %vm314_vm6, %v4342_v58  ;;  %3795 = vmatprep.subr.msk.mxu1 %vm314_vm6, %v519_v62 }
 0x3c9   :  { %3796 = vmatpush3.xpose.msk.msra.mxu1 %vm314_vm6, %v519_v62  ;;  %3799 = vmatprep.mubr.msk.f32.mxu1 %vm314_vm6, %v513_v63  ;;  %v304_v62 = vld [vmem:[%s4871_s7] sm:$0xff] }
 0x3cb   :  { %v517_v0 = vpop.permute.xlu1 %516 }
 0x3cc   :  { %3797 = vmatprep.subr.msk.mxu1 %vm314_vm6, %v517_v0 }
 0x3cd   :  { %3798 = vmatpush3.xpose.msk.msra.mxu1 %vm314_vm6, %v517_v0 }
 0x3ce   :  { %3814 = vmatprep.subr.mxu1 %v304_v62 }
 0x3cf   :  { %v515_v1 = vpop.permute.xlu1 %514 }
 0x3d0   :  { %3800 = vmatmul.mubr.msk.f32.vlgmr.msra.gmra.mxu1 %vm314_vm6, %v515_v1 }
 0x3d1   :  { %3815 = vmatpush3.msra.mxu1 %v304_v62 }
 0x488   :  { %v3787_v2 = vpop.f32.mrf.mxu1 }
 0x489   :  { %v399_v4 = vmul.f32 0.35355338, %v3787_v2 }
 0x48a   :  { %v389_v5 = vpop.f32.mrf.mxu1 }
 0x48b   :  { %v398_v7 = vmul.f32 0.35355338, %v389_v5  ;;  %v401_v8 = vadd.f32 %v399_v4, %v4375_v3 }
 0x48d   :  { %v406_v9 = vsel %vm402_vm7, %v401_v8, -inf  ;;  %v400_v10 = vadd.f32 %v398_v7, %v4380_v6 }
 0x48e   :  { %407 = vmax.xlane.f32.xlu0 %v406_v9 }
 0x48f   :  { %v403_v11 = vsel %vm402_vm7, %v400_v10, -inf }
 0x490   :  { %v3801_v12 = vpop.f32.mrf.mxu1  ;;  %404 = vmax.xlane.f32.xlu1 %v403_v11 }
 0x491   :  { %v604_v13 = vmul.f32 0.35355338, %v3801_v12 }
 0x492   :  { %v594_v14 = vpop.f32.mrf.mxu1 }
 0x493   :  { %v603_v15 = vmul.f32 0.35355338, %v594_v14  ;;  %v606_v16 = vadd.f32 %v604_v13, %v4375_v3 }
 0x495   :  { %v610_v17 = vsel %vm402_vm7, %v606_v16, -inf  ;;  %v605_v18 = vadd.f32 %v603_v15, %v4380_v6 }
 0x496   :  { %611 = vmax.xlane.f32.xlu1 %v610_v17 }
 0x497   :  { %v607_v19 = vsel %vm402_vm7, %v605_v18, -inf }
 0x49a   :  { %608 = vmax.xlane.f32.xlu1 %v607_v19 }
 0x4ab   :  { %427 = vrot.lane.b32.xlu1 %v4342_v58, %s4171_s28 }
 0x517   :  { %v408_v20 = vpop.xlane.xlu0 %407 }
 0x518   :  { %v410_v21 = vsub.f32 %v401_v8, %v408_v20 }
 0x519   :  { %v405_v22 = vpop.xlane.xlu1 %404 }
 0x51a   :  { %v413_v23 = vmul.f32 1.442695, %v410_v21  ;;  %v409_v26 = vsub.f32 %v400_v10, %v405_v22 }
 0x51c   :  { %4072 = vpow2.f32 %v413_v23  ;;  %v411_v27 = vmul.f32 1.442695, %v409_v26 }
 0x51e   :  { %4074 = vpow2.f32 %v411_v27 }
 0x51f   :  { %v612_v28 = vpop.xlane.xlu1 %611 }
 0x520   :  { %v614_v29 = vsub.f32 %v606_v16, %v612_v28 }
 0x522   :  { %v617_v30 = vmul.f32 1.442695, %v614_v29 }
 0x523   :  { %v609_v31 = vpop.xlane.xlu1 %608 }
 0x524   :  { %4076 = vpow2.f32 %v617_v30  ;;  %v613_v39 = vsub.f32 %v605_v18, %v609_v31 }
 0x526   :  { %v615_v40 = vmul.f32 1.442695, %v613_v39 }
 0x527   :  { %v428_v32 = vpop.permute.xlu1 %427 }
 0x528   :  { %3788 = vmatprep.subr.mxu0 %v428_v32  ;;  %4078 = vpow2.f32 %v615_v40 }
 0x529   :  { %v4073_v33 = vpop.eup %4072  ;;  %3789 = vmatpush3.msra.mxu0 %v428_v32 }
 0x52a   :  { %v418_v34 = vsel %vm402_vm7, %v4073_v33, 0.0 }
 0x52b   :  { %v4075_v35 = vpop.eup %4074  ;;  %419 = vadd.xlane.f32.xlu0 %v418_v34 }
 0x52c   :  { %v415_v36 = vsel %vm402_vm7, %v4075_v35, 0.0 }
 0x52d   :  { %416 = vadd.xlane.f32.xlu1 %v415_v36 }
 0x531   :  { %v4077_v37 = vpop.eup %4076 }
 0x532   :  { %v622_v38 = vsel %vm402_vm7, %v4077_v37, 0.0 }
 0x533   :  { %623 = vadd.xlane.f32.xlu0 %v622_v38 }
 0x535   :  { %v4079_v41 = vpop.eup %4078 }
 0x536   :  { %v619_v42 = vsel %vm402_vm7, %v4079_v41, 0.0 }
 0x53e   :  { %631 = vrot.lane.b32.xlu1 %v4342_v58, %s4172_s29 }
 0x549   :  { %425 = vrot.lane.b32.xlu0 %v4346_v59, %s4171_s28 }
 0x54d   :  { %884 = vrot.lane.b32.xlu0 %v4342_v58, %s4173_s30 }
 0x551   :  { %878 = vrot.lane.b32.xlu0 %v4346_v59, %s4174_s0 }
 0x555   :  { %1171 = vrot.lane.b32.xlu0 %v4342_v58, %s4892_s19 }
 0x559   :  { %1165 = vrot.lane.b32.xlu0 %v4346_v59, %s4890_s1 }
 0x562   :  { %620 = vadd.xlane.f32.xlu1 %v619_v42 }
 0x573   :  { %629 = vrot.lane.b32.xlu1 %v4346_v59, %s4172_s29 }
 0x577   :  { %882 = vrot.lane.b32.xlu1 %v4346_v59, %s4173_s30 }
 0x57b   :  { %880 = vrot.lane.b32.xlu1 %v4342_v58, %s4174_s0 }
 0x57f   :  { %1169 = vrot.lane.b32.xlu1 %v4346_v59, %s4892_s19 }
 0x583   :  { %1167 = vrot.lane.b32.xlu1 %v4342_v58, %s4890_s1 }
 0x5b4   :  { %v420_v43 = vpop.xlane.xlu0 %419 }
 0x5b5   :  { %4080 = vrcp.f32 %v420_v43 }
 0x5b6   :  { %v417_v44 = vpop.xlane.xlu1 %416 }
 0x5b7   :  { %4082 = vrcp.f32 %v417_v44 }
 0x5ba   :  { %v632_v47 = vpop.permute.xlu1 %631 }
 0x5bc   :  { %v624_v45 = vpop.xlane.xlu0 %623 }
 0x5bd   :  { %4084 = vrcp.f32 %v624_v45 }
 0x5c0   :  { %v426_v46 = vpop.permute.xlu0 %425 }
 0x5c1   :  { %3790 = vmatprep.subr.mxu0 %v426_v46 }
 0x5c2   :  { %3791 = vmatpush3.msra.mxu0 %v426_v46  ;;  %v4081_v48 = vpop.eup %4080 }
 0x5c3   :  { %3802 = vmatprep.subr.mxu0 %v632_v47  ;;  %v424_v51 = vmul.f32 %v4081_v48, %v4073_v33 }
 0x5c4   :  { %v4083_v49 = vpop.eup %4082  ;;  %v885_v61 = vpop.permute.xlu0 %884 }
 0x5c5   :  { %v422_v50 = vmul.f32 %v4083_v49, %v4075_v35 }
 0x5c7   :  { %3792 = vmatprep.mubr.msk.f32.mxu0 %vm402_vm7, %v422_v50 }
 0x5c8   :  { %3793 = vmatmul.mubr.msk.f32.vlgmr.msra.gmra.mxu0 %vm402_vm7, %v424_v51  ;;  %v879_v1 = vpop.permute.xlu0 %878 }
 0x5c9   :  { %3803 = vmatpush3.msra.mxu0 %v632_v47 }
 0x5ca   :  { %v4085_v55 = vpop.eup %4084 }
 0x5cb   :  { %v628_v60 = vmul.f32 %v4085_v55, %v4077_v37 }
 0x5cc   :  { %v1172_v7 = vpop.permute.xlu0 %1171 }
 0x5d0   :  { %v1166_v9 = vpop.permute.xlu0 %1165 }
 0x5eb   :  { %v621_v52 = vpop.xlane.xlu1 %620 }
 0x5ec   :  { %4086 = vrcp.f32 %v621_v52 }
 0x5ef   :  { %v630_v53 = vpop.permute.xlu1 %629 }
 0x5f0   :  { %3804 = vmatprep.subr.mxu0 %v630_v53 }
 0x5f1   :  { %3805 = vmatpush3.msra.mxu0 %v630_v53  ;;  %v306_v53 = vld [vmem:[%s4871_s7 + $0x10] sm:$0xff] }
 0x5f2   :  { %3809 = vmatprep.subr.mxu0 %v305_v54 }
 0x5f3   :  { %v883_v4 = vpop.permute.xlu1 %882 }
 0x5f7   :  { %v881_v8 = vpop.permute.xlu1 %880 }
 0x5f9   :  { %v4087_v56 = vpop.eup %4086 }
 0x5fa   :  { %v626_v57 = vmul.f32 %v4087_v56, %v4079_v41 }
 0x5fb   :  { %v1170_v10 = vpop.permute.xlu1 %1169 }
 0x5fc   :  { %3806 = vmatprep.mubr.msk.f32.mxu0 %vm402_vm7, %v626_v57 }
 0x5fd   :  { %3807 = vmatmul.mubr.msk.f32.vlgmr.msra.gmra.mxu0 %vm402_vm7, %v628_v60 }
 0x5fe   :  { %3810 = vmatpush3.msra.mxu0 %v305_v54 }
 0x5ff   :  { %3819 = vmatprep.subr.msk.mxu0 %vm314_vm6, %v885_v61  ;;  %v1168_v11 = vpop.permute.xlu1 %1167 }
 0x688   :  { %v3794_v63 = vpop.f32.mrf.mxu0 }
 0x68a   :  { %v503_v0 = vpop.f32.mrf.mxu0 }
 0x68b   :  { %3816 = vmatprep.mubr.msk.f32.mxu1 %vm314_vm6, %v503_v0 }
 0x68c   :  { %3817 = vmatmul.mubr.msk.f32.vlgmr.msra.gmra.mxu1 %vm314_vm6, %v3794_v63 }
 0x6bd   :  { %v3808_v2 = vpop.f32.mrf.mxu0 }
 0x6bf   :  { %v707_v5 = vpop.f32.mrf.mxu0 }
 0x6c0   :  { %3811 = vmatprep.mubr.msk.f32.mxu0 %vm314_vm6, %v707_v5 }
 0x6c1   :  { %3812 = vmatmul.mubr.msk.f32.vlgmr.msra.gmra.mxu0 %vm314_vm6, %v3808_v2 }
 0x6c2   :  { %3820 = vmatpush3.xpose.msk.msra.mxu0 %vm314_vm6, %v885_v61  ;;  %3823 = vmatprep.mubr.msk.f32.mxu0 %vm314_vm6, %v879_v1 }
 0x6c3   :  { %3821 = vmatprep.subr.msk.mxu0 %vm314_vm6, %v883_v4 }
 0x6c6   :  { %3822 = vmatpush3.xpose.msk.msra.mxu0 %vm314_vm6, %v883_v4 }
 0x6c7   :  { %3838 = vmatprep.subr.msk.mxu0 %vm314_vm6, %v1172_v7 }
 0x6c9   :  { %3824 = vmatmul.mubr.msk.f32.vlgmr.msra.gmra.mxu0 %vm314_vm6, %v881_v8 }
 0x6ca   :  { %3839 = vmatpush3.xpose.msk.msra.mxu0 %vm314_vm6, %v1172_v7  ;;  %3842 = vmatprep.mubr.msk.f32.mxu0 %vm314_vm6, %v1166_v9 }
 0x6cb   :  { %3840 = vmatprep.subr.msk.mxu0 %vm314_vm6, %v1170_v10 }
 0x6ce   :  { %3841 = vmatpush3.xpose.msk.msra.mxu0 %vm314_vm6, %v1170_v10 }
 0x6d1   :  { %3843 = vmatmul.mubr.msk.f32.vlgmr.msra.gmra.mxu0 %vm314_vm6, %v1168_v11 }
 0x74c   :  { %v3818_v12 = vpop.f32.mrf.mxu1 }
 0x74e   :  { %v869_v2 = vpop.f32.mrf.mxu1 }
 0x781   :  { %v3813_v13 = vpop.f32.mrf.mxu0 }
 0x782   :  { %v4444_v14 = vadd.f32 %v3818_v12, %v3813_v13  ;;  %v307_v12 = vld [vmem:[%s4871_s7 + $0x18] sm:$0xff] }
 0x783   :  { %v4446_v15 = vpop.f32.mrf.mxu0 }
 0x789   :  { %v3825_v16 = vpop.f32.mrf.mxu0 }
 0x78a   :  { %v970_v17 = vmul.f32 0.35355338, %v3825_v16  ;;  %v870_v16 = vadd.f32 %v869_v2, %v4446_v15  ;;  %v1616_v2 = vld [vmem:[%s4875_s12 + $0x40] sm:$0xff] }
 0x78b   :  { %v960_v18 = vpop.f32.mrf.mxu0 }
 0x78c   :  { %v969_v19 = vmul.f32 0.35355338, %v960_v18  ;;  %v972_v20 = vadd.f32 %v970_v17, %v4375_v3 }
 0x78e   :  { %v976_v21 = vsel %vm402_vm7, %v972_v20, -inf  ;;  %v971_v22 = vadd.f32 %v969_v19, %v4380_v6 }
 0x78f   :  { %977 = vmax.xlane.f32.xlu1 %v976_v21 }
 0x790   :  { %v973_v23 = vsel %vm402_vm7, %v971_v22, -inf }
 0x791   :  { %974 = vmax.xlane.f32.xlu0 %v973_v23  ;;  %v3844_v26 = vpop.f32.mrf.mxu0 }
 0x792   :  { %v1257_v45 = vmul.f32 0.35355338, %v3844_v26 }
 0x793   :  { %v1247_v27 = vpop.f32.mrf.mxu0 }
 0x794   :  { %v1256_v28 = vmul.f32 0.35355338, %v1247_v27  ;;  %v1259_v48 = vadd.f32 %v1257_v45, %v4375_v3 }
 0x796   :  { %v1258_v29 = vadd.f32 %v1256_v28, %v4380_v6  ;;  %v1263_v49 = vsel %vm402_vm7, %v1259_v48, -inf }
 0x798   :  { %v1260_v30 = vsel %vm402_vm7, %v1258_v29, -inf }
 0x7a0   :  { %997 = vrot.lane.b32.xlu1 %v4342_v58, %s4888_s26 }
 0x7c4   :  { %1261 = vmax.xlane.f32.xlu1 %v1260_v30 }
 0x818   :  { %v978_v31 = vpop.xlane.xlu1 %977 }
 0x819   :  { %v980_v32 = vsub.f32 %v972_v20, %v978_v31 }
 0x81a   :  { %v975_v33 = vpop.xlane.xlu0 %974 }
 0x81b   :  { %v983_v34 = vmul.f32 1.442695, %v980_v32  ;;  %v979_v35 = vsub.f32 %v971_v22, %v975_v33 }
 0x81c   :  { %v998_v36 = vpop.permute.xlu1 %997 }
 0x81d   :  { %4088 = vpow2.f32 %v983_v34  ;;  %v981_v37 = vmul.f32 1.442695, %v979_v35  ;;  %3826 = vmatprep.subr.mxu1 %v998_v36 }
 0x81e   :  { %3827 = vmatpush3.msra.mxu1 %v998_v36 }
 0x81f   :  { %4090 = vpow2.f32 %v981_v37 }
 0x82a   :  { %v4089_v38 = vpop.eup %4088 }
 0x82b   :  { %v988_v39 = vsel %vm402_vm7, %v4089_v38, 0.0 }
 0x82c   :  { %v4091_v40 = vpop.eup %4090  ;;  %989 = vadd.xlane.f32.xlu0 %v988_v39  ;;  %v1500_v39 = vld [vmem:[%s4872_s10 + $0x10] sm:$0xff] }
 0x82d   :  { %v985_v41 = vsel %vm402_vm7, %v4091_v40, 0.0 }
 0x830   :  { %986 = vadd.xlane.f32.xlu0 %v985_v41  ;;  %v1498_v41 = vld [vmem:[%s4872_s10] sm:$0xff] }
 0x846   :  { %995 = vrot.lane.b32.xlu0 %v4346_v59, %s4888_s26 }
 0x84d   :  { %v1262_v42 = vpop.xlane.xlu1 %1261 }
 0x84e   :  { %v1266_v43 = vsub.f32 %v1258_v29, %v1262_v42 }
 0x850   :  { %v1268_v44 = vmul.f32 1.442695, %v1266_v43 }
 0x852   :  { %4092 = vpow2.f32 %v1268_v44 }
 0x85f   :  { %v4093_v46 = vpop.eup %4092 }
 0x860   :  { %v1272_v47 = vsel %vm402_vm7, %v4093_v46, 0.0 }
 0x861   :  { %1273 = vadd.xlane.f32.xlu1 %v1272_v47 }
 0x865   :  { %1264 = vmax.xlane.f32.xlu0 %v1263_v49  ;;  %v3493_v49 = vld [vmem:[%s4873_s8] ss:$0 sm:$0xff] }
 0x872   :  { %1284 = vrot.lane.b32.xlu1 %v4342_v58, %s4886_s27 }
 0x8b5   :  { %v990_v50 = vpop.xlane.xlu0 %989 }
 0x8b6   :  { %4094 = vrcp.f32 %v990_v50 }
 0x8b9   :  { %v987_v51 = vpop.xlane.xlu0 %986 }
 0x8ba   :  { %4096 = vrcp.f32 %v987_v51 }
 0x8bd   :  { %v996_v52 = vpop.permute.xlu0 %995 }
 0x8be   :  { %3828 = vmatprep.subr.mxu1 %v996_v52 }
 0x8bf   :  { %3829 = vmatpush3.msra.mxu1 %v996_v52 }
 0x8c0   :  { %3833 = vmatprep.subr.mxu1 %v306_v53 }
 0x8c3   :  { %v4095_v54 = vpop.eup %4094 }
 0x8c4   :  { %v994_v57 = vmul.f32 %v4095_v54, %v4089_v38  ;;  %v1501_v38 = vld [vmem:[%s4872_s10 + $0x18] sm:$0xff]  ;;  %v3494_v54 = vld [vmem:[%s4874_s9] ss:$0 sm:$0xff] }
 0x8c5   :  { %3857 = vmatprep.subr.mxu0 %v1501_v38 }
 0x8c6   :  { %3858 = vmatpush3.msra.mxu0 %v1501_v38 }
 0x8c7   :  { %v4097_v55 = vpop.eup %4096  ;;  %3859 = vmatprep.subr.mxu0 %v1500_v39 }
 0x8c8   :  { %v992_v56 = vmul.f32 %v4097_v55, %v4091_v40  ;;  %v1499_v40 = vld [vmem:[%s4872_s10 + $0x8] sm:$0xff]  ;;  %3860 = vmatpush3.msra.mxu0 %v1500_v39 }
 0x8c9   :  { %3861 = vmatprep.subr.mxu0 %v1499_v40 }
 0x8ca   :  { %3830 = vmatprep.mubr.msk.f32.mxu1 %vm402_vm7, %v992_v56  ;;  %3862 = vmatpush3.msra.mxu0 %v1499_v40 }
 0x8cb   :  { %3831 = vmatmul.mubr.msk.f32.vlgmr.msra.gmra.mxu1 %vm402_vm7, %v994_v57  ;;  %3863 = vmatprep.subr.mxu0 %v1498_v41 }
 0x8cc   :  { %3834 = vmatpush3.msra.mxu1 %v306_v53  ;;  %3864 = vmatpush3.msra.mxu0 %v1498_v41 }
 0x8ea   :  { %v1274_v58 = vpop.xlane.xlu1 %1273 }
 0x8ee   :  { %v1265_v60 = vpop.xlane.xlu0 %1264  ;;  %v1285_v61 = vpop.permute.xlu1 %1284 }
 0x8ef   :  { %v1267_v62 = vsub.f32 %v1259_v48, %v1265_v60  ;;  %3845 = vmatprep.subr.mxu1 %v1285_v61  ;;  %v1622_v60 = vld [vmem:[%s4875_s12 + $0x70] sm:$0xff] }
 0x8f1   :  { %v1270_v63 = vmul.f32 1.442695, %v1267_v62  ;;  %v1620_v62 = vld [vmem:[%s4875_s12 + $0x60] sm:$0xff] }
 0x8f3   :  { %4098 = vpow2.f32 %v1270_v63  ;;  %v1619_v63 = vld [vmem:[%s4875_s12 + $0x58] sm:$0xff] }
 0x8f4   :  { %4100 = vrcp.f32 %v1274_v58  ;;  %v1623_v58 = vld [vmem:[%s4875_s12 + $0x78] sm:$0xff] }
 0x900   :  { %v4099_v0 = vpop.eup %4098 }
 0x901   :  { %v1275_v1 = vsel %vm402_vm7, %v4099_v0, 0.0  ;;  %v4101_v4 = vpop.eup %4100 }
 0x902   :  { %1276 = vadd.xlane.f32.xlu0 %v1275_v1  ;;  %v1279_v9 = vmul.f32 %v4101_v4, %v4093_v46  ;;  %v1617_v1 = vld [vmem:[%s4875_s12 + $0x48] sm:$0xff]  ;;  %v1615_v4 = vld [vmem:[%s4875_s12 + $0x38] sm:$0xff] }
 0x918   :  { %1282 = vrot.lane.b32.xlu0 %v4346_v59, %s4886_s27 }
 0x98b   :  { %v1277_v5 = vpop.xlane.xlu0 %1276  ;;  %v3832_v7 = vpop.f32.mrf.mxu1 }
 0x98c   :  { %4102 = vrcp.f32 %v1277_v5  ;;  %v1614_v5 = vld [vmem:[%s4875_s12 + $0x30] sm:$0xff] }
 0x98d   :  { %v1073_v8 = vpop.f32.mrf.mxu1 }
 0x98e   :  { %3835 = vmatprep.mubr.msk.f32.mxu1 %vm314_vm6, %v1073_v8  ;;  %v1612_v8 = vld [vmem:[%s4875_s12 + $0x20] sm:$0xff] }
 0x98f   :  { %v1283_v10 = vpop.permute.xlu0 %1282  ;;  %3836 = vmatmul.mubr.msk.f32.vlgmr.msra.gmra.mxu1 %vm314_vm6, %v3832_v7  ;;  %v1613_v7 = vld [vmem:[%s4875_s12 + $0x28] sm:$0xff] }
 0x990   :  { %3846 = vmatpush3.msra.mxu1 %v1285_v61  ;;  %3849 = vmatprep.mubr.msk.f32.mxu1 %vm402_vm7, %v1279_v9  ;;  %v1621_v61 = vld [vmem:[%s4875_s12 + $0x68] sm:$0xff]  ;;  %v1611_v9 = vld [vmem:[%s4875_s12 + $0x18] sm:$0xff] }
 0x991   :  { %3847 = vmatprep.subr.mxu1 %v1283_v10 }
 0x992   :  { %3848 = vmatpush3.msra.mxu1 %v1283_v10  ;;  %v1610_v10 = vld [vmem:[%s4875_s12 + $0x10] sm:$0xff] }
 0x993   :  { %3852 = vmatprep.subr.mxu1 %v307_v12 }
 0x999   :  { %v4103_v11 = vpop.eup %4102 }
 0x99a   :  { %v1281_v59 = vmul.f32 %v4103_v11, %v4099_v0  ;;  %v1618_v0 = vld [vmem:[%s4875_s12 + $0x50] sm:$0xff]  ;;  %v1609_v11 = vld [vmem:[%s4875_s12 + $0x8] sm:$0xff] }
 0x99c   :  { %3850 = vmatmul.mubr.msk.f32.vlgmr.msra.gmra.mxu1 %vm402_vm7, %v1281_v59  ;;  %v1608_v59 = vld [vmem:[%s4875_s12] sm:$0xff] }
 0x99d   :  { %3853 = vmatpush3.msra.mxu1 %v307_v12  ;;  %v3495_v12 = vld [vmem:[%s4876_s11] ss:$0 sm:$0xff] }
 0x99e   :  { %3868 = vmatprep.subr.mxu1 %v1623_v58 }
 0xa4f   :  { %v3837_v13 = vpop.f32.mrf.mxu1 }
 0xa50   :  { %v1164_v17 = vadd.f32 %v3837_v13, %v4444_v14 }
 0xa51   :  { %v1154_v18 = vpop.f32.mrf.mxu1 }
 0xa52   :  { %v1163_v19 = vadd.f32 %v1154_v18, %v870_v16 }
 0xa5c   :  { %v3851_v20 = vpop.f32.mrf.mxu1 }
 0xa5e   :  { %v1360_v21 = vpop.f32.mrf.mxu1 }
 0xa5f   :  { %3854 = vmatprep.mubr.msk.f32.mxu1 %vm314_vm6, %v1360_v21 }
 0xa60   :  { %3855 = vmatmul.mubr.msk.f32.vlgmr.msra.gmra.mxu1 %vm314_vm6, %v3851_v20 }
 0xa61   :  { %3869 = vmatpush3.msra.mxu1 %v1623_v58 }
 0xa62   :  { %3870 = vmatprep.subr.mxu1 %v1622_v60 }
 0xa63   :  { %3871 = vmatpush3.msra.mxu1 %v1622_v60 }
 0xa64   :  { %3872 = vmatprep.subr.mxu1 %v1621_v61 }
 0xa65   :  { %3873 = vmatpush3.msra.mxu1 %v1621_v61 }
 0xa66   :  { %3874 = vmatprep.subr.mxu1 %v1620_v62 }
 0xa67   :  { %3875 = vmatpush3.msra.mxu1 %v1620_v62 }
 0xa68   :  { %3876 = vmatprep.subr.mxu1 %v1619_v63 }
 0xa69   :  { %3877 = vmatpush3.msra.mxu1 %v1619_v63 }
 0xa6a   :  { %3878 = vmatprep.subr.mxu1 %v1618_v0 }
 0xa6b   :  { %3879 = vmatpush3.msra.mxu1 %v1618_v0 }
 0xa6c   :  { %3880 = vmatprep.subr.mxu1 %v1617_v1 }
 0xa6d   :  { %3881 = vmatpush3.msra.mxu1 %v1617_v1 }
 0xa6e   :  { %3882 = vmatprep.subr.mxu1 %v1616_v2 }
 0xa6f   :  { %3883 = vmatpush3.msra.mxu1 %v1616_v2  ;;  %v3501_v2 = vld [vmem:[%s4868_s4 + $0x1] ss:$0 sm:$0xff] }
 0xa70   :  { %3884 = vmatprep.subr.mxu1 %v1615_v4 }
 0xa71   :  { %3885 = vmatpush3.msra.mxu1 %v1615_v4 }
 0xa72   :  { %3886 = vmatprep.subr.mxu1 %v1614_v5 }
 0xa73   :  { %3887 = vmatpush3.msra.mxu1 %v1614_v5 }
 0xa74   :  { %3888 = vmatprep.subr.mxu1 %v1613_v7 }
 0xa75   :  { %3889 = vmatpush3.msra.mxu1 %v1613_v7 }
 0xa76   :  { %3890 = vmatprep.subr.mxu1 %v1612_v8 }
 0xa77   :  { %3891 = vmatpush3.msra.mxu1 %v1612_v8 }
 0xa78   :  { %3892 = vmatprep.subr.mxu1 %v1611_v9 }
 0xa79   :  { %3893 = vmatpush3.msra.mxu1 %v1611_v9  ;;  %v3502_v9 = vld [vmem:[%s4869_s5 + $0x1] ss:$0 sm:$0xff] }
 0xa7a   :  { %3894 = vmatprep.subr.mxu1 %v1610_v10 }
 0xa7b   :  { %3895 = vmatpush3.msra.mxu1 %v1610_v10 }
 0xa7c   :  { %3896 = vmatprep.subr.mxu1 %v1609_v11 }
 0xa7d   :  { %3897 = vmatpush3.msra.mxu1 %v1609_v11 }
 0xa7e   :  { %3898 = vmatprep.subr.mxu1 %v1608_v59 }
 0xa7f   :  { %3899 = vmatpush3.msra.mxu1 %v1608_v59 }
 0xb20   :  { %v3856_v22 = vpop.f32.mrf.mxu1 }
 0xb21   :  { %v1451_v23 = vadd.f32 %v3856_v22, %v1164_v17 }
 0xb22   :  { %v1441_v26 = vpop.f32.mrf.mxu1 }
 0xb23   :  { %v4485_v27 = vadd.f32 %v1451_v23, %v4312_v25  ;;  %v1450_v28 = vadd.f32 %v1441_v26, %v1163_v19 }
 0xb25   :  { %v4488_v29 = vadd.f32 %v1450_v28, %v4310_v24  ;;  %v1459_v14 = vsel %vm175_vm5, %v4485_v27, 0.0 }
 0xb26   :  { %1460 = vadd.xlane.f32.xlu0 %v1459_v14 }
 0xb27   :  { %v1456_v15 = vsel %vm175_vm5, %v4488_v29, 0.0 }
 0xb28   :  { %1457 = vadd.xlane.f32.xlu1 %v1456_v15 }
 0xbaf   :  { %v1461_v30 = vpop.xlane.xlu0 %1460 }
 0xbb0   :  { %v1463_v31 = vmul.f32 0.03125, %v1461_v30 }
 0xbb1   :  { %v1458_v32 = vpop.xlane.xlu1 %1457 }
 0xbb2   :  { %v1465_v33 = vsub.f32 %v4485_v27, %v1463_v31  ;;  %v1462_v34 = vmul.f32 0.03125, %v1458_v32 }
 0xbb4   :  { %v1464_v25 = vsub.f32 %v4488_v29, %v1462_v34  ;;  %v1467_v35 = vmul.f32 %v1465_v33, %v1465_v33 }
 0xbb6   :  { %v1471_v24 = vsel %vm175_vm5, %v1467_v35, 0.0  ;;  %v1466_v36 = vmul.f32 %v1464_v25, %v1464_v25 }
 0xbb7   :  { %1472 = vadd.xlane.f32.xlu0 %v1471_v24 }
 0xbb8   :  { %v1468_v37 = vsel %vm175_vm5, %v1466_v36, 0.0 }
 0xbb9   :  { %1469 = vadd.xlane.f32.xlu1 %v1468_v37  ;;  %v3498_v37 = vld [vmem:[%s4877_s13] ss:$0 sm:$0xff] }
 0xc40   :  { %v1473_v42 = vpop.xlane.xlu0 %1472 }
 0xc41   :  { %v1475_v43 = vmul.f32 0.03125, %v1473_v42 }
 0xc42   :  { %v1470_v44 = vpop.xlane.xlu1 %1469 }
 0xc43   :  { %v1477_v45 = vadd.f32 1e-05, %v1475_v43  ;;  %v1474_v46 = vmul.f32 0.03125, %v1470_v44 }
 0xc45   :  { %4104 = vrsqrt.f32 %v1477_v45  ;;  %v1476_v47 = vadd.f32 1e-05, %v1474_v46 }
 0xc47   :  { %4106 = vrsqrt.f32 %v1476_v47 }
 0xc52   :  { %v4105_v48 = vpop.eup %4104 }
 0xc53   :  { %v1481_v50 = vmul.f32 %v4105_v48, %v1465_v33 }
 0xc54   :  { %v4107_v51 = vpop.eup %4106 }
 0xc55   :  { %v1480_v52 = vmul.f32 %v4107_v51, %v1464_v25  ;;  %v1489_v53 = vmul.f32 %v3493_v49, %v1481_v50 }
 0xc57   :  { %v1488_v55 = vmul.f32 %v3493_v49, %v1480_v52  ;;  %v1497_v57 = vadd.f32 %v3494_v54, %v1489_v53 }
 0xc59   :  { %v1496_v56 = vadd.f32 %v3494_v54, %v1488_v55  ;;  %v3506_v54 = vld [vmem:[%s4867_s6 + $0x38] sm:$0xff]  ;;  %v3505_v55 = vld [vmem:[%s4867_s6 + $0x30] sm:$0xff] }
 0xc5a   :  { %3903 = vmatprep.subr.mxu0 %v3506_v54 }
 0xc5b   :  { %3865 = vmatprep.mubr.msk.f32.mxu0 %vm175_vm5, %v1496_v56  ;;  %v3504_v56 = vld [vmem:[%s4867_s6 + $0x28] sm:$0xff] }
 0xc5c   :  { %3866 = vmatmul.mubr.msk.f32.vlgmr.msra.gmra.mxu0 %vm175_vm5, %v1497_v57  ;;  %v3503_v57 = vld [vmem:[%s4867_s6 + $0x20] sm:$0xff] }
 0xc5d   :  { %3904 = vmatpush3.msra.mxu0 %v3506_v54 }
 0xc5e   :  { %3905 = vmatprep.subr.mxu0 %v3505_v55 }
 0xc5f   :  { %3906 = vmatpush3.msra.mxu0 %v3505_v55 }
 0xc60   :  { %3907 = vmatprep.subr.mxu0 %v3504_v56 }
 0xc61   :  { %3908 = vmatpush3.msra.mxu0 %v3504_v56 }
 0xc62   :  { %3909 = vmatprep.subr.mxu0 %v3503_v57 }
 0xc63   :  { %3910 = vmatpush3.msra.mxu0 %v3503_v57 }
 0xd1c   :  { %v3867_v13 = vpop.f32.mrf.mxu0 }
 0xd1d   :  { %v1587_v16 = vadd.f32 %v3867_v13, %v3495_v12 }
 0xd1e   :  { %v1581_v17 = vpop.f32.mrf.mxu0 }
 0xd1f   :  { %v1591_v18 = vmul.f32 %v1587_v16, %v1587_v16  ;;  %v1582_v19 = vadd.f32 %v3495_v12, %v1581_v17 }
 0xd21   :  { %v1593_v20 = vmul.f32 %v1591_v18, %v1587_v16  ;;  %v1590_v21 = vmul.f32 %v1582_v19, %v1582_v19 }
 0xd23   :  { %v1595_v22 = vmul.f32 0.044715, %v1593_v20  ;;  %v1592_v23 = vmul.f32 %v1590_v21, %v1582_v19 }
 0xd25   :  { %v1597_v26 = vadd.f32 %v1595_v22, %v1587_v16  ;;  %v1594_v28 = vmul.f32 0.044715, %v1592_v23 }
 0xd27   :  { %v1599_v14 = vmul.f32 0.7978846, %v1597_v26  ;;  %v1596_v15 = vadd.f32 %v1594_v28, %v1582_v19 }
 0xd29   :  { %4108 = vtanh.f32 %v1599_v14  ;;  %v1598_v30 = vmul.f32 0.7978846, %v1596_v15 }
 0xd2b   :  { %4110 = vtanh.f32 %v1598_v30 }
 0xd36   :  { %v4109_v31 = vpop.eup %4108 }
 0xd37   :  { %v1603_v32 = vadd.f32 1.0, %v4109_v31 }
 0xd38   :  { %v4111_v33 = vpop.eup %4110 }
 0xd39   :  { %v1602_v34 = vadd.f32 1.0, %v4111_v33  ;;  %v1605_v25 = vmul.f32 0.5, %v1603_v32 }
 0xd3b   :  { %v1604_v35 = vmul.f32 0.5, %v1602_v34  ;;  %v1607_v36 = vmul.f32 %v1605_v25, %v1587_v16 }
 0xd3d   :  { %v1606_v24 = vmul.f32 %v1604_v35, %v1582_v19 }
 0xd3f   :  { %3900 = vmatprep.mubr.f32.mxu1 %v1606_v24 }
 0xd40   :  { %3901 = vmatmul.mubr.f32.vlgmr.msra.gmra.mxu1 %v1607_v36 }
 0xe00   :  { %v3902_v38 = vpop.f32.mrf.mxu1 }
 0xe01   :  { %v1703_v39 = vadd.f32 %v3902_v38, %v3498_v37 }
 0xe02   :  { %v1697_v40 = vpop.f32.mrf.mxu1 }
 0xe03   :  { %v4573_v41 = vadd.f32 %v1703_v39, %v4485_v27  ;;  %v1698_v42 = vadd.f32 %v3498_v37, %v1697_v40 }
 0xe05   :  { %v4576_v43 = vadd.f32 %v1698_v42, %v4488_v29  ;;  %v1715_v44 = vsel %vm175_vm5, %v4573_v41, 0.0 }
 0xe06   :  { %1716 = vadd.xlane.f32.xlu0 %v1715_v44 }
 0xe07   :  { %v1712_v45 = vsel %vm175_vm5, %v4576_v43, 0.0 }
 0xe08   :  { %1713 = vadd.xlane.f32.xlu1 %v1712_v45 }
 0xe8f   :  { %v1717_v46 = vpop.xlane.xlu0 %1716 }
 0xe90   :  { %v1719_v47 = vmul.f32 0.03125, %v1717_v46 }
 0xe91   :  { %v1714_v48 = vpop.xlane.xlu1 %1713 }
 0xe92   :  { %v1721_v49 = vsub.f32 %v4573_v41, %v1719_v47  ;;  %v1718_v50 = vmul.f32 0.03125, %v1714_v48 }
 0xe94   :  { %v1720_v27 = vsub.f32 %v4576_v43, %v1718_v50  ;;  %v1723_v51 = vmul.f32 %v1721_v49, %v1721_v49 }
 0xe96   :  { %v1727_v29 = vsel %vm175_vm5, %v1723_v51, 0.0  ;;  %v1722_v52 = vmul.f32 %v1720_v27, %v1720_v27 }
 0xe97   :  { %1728 = vadd.xlane.f32.xlu0 %v1727_v29 }
 0xe98   :  { %v1724_v53 = vsel %vm175_vm5, %v1722_v52, 0.0 }
 0xe99   :  { %1725 = vadd.xlane.f32.xlu1 %v1724_v53 }
 0xf20   :  { %v1729_v58 = vpop.xlane.xlu0 %1728 }
 0xf21   :  { %v1731_v60 = vmul.f32 0.03125, %v1729_v58  ;;  %v3510_v58 = vld [vmem:[%s4871_s7 + $0x28] sm:$0xff] }
 0xf22   :  { %v1726_v61 = vpop.xlane.xlu1 %1725 }
 0xf23   :  { %v1733_v62 = vadd.f32 1e-05, %v1731_v60  ;;  %v1730_v63 = vmul.f32 0.03125, %v1726_v61 }
 0xf25   :  { %4112 = vrsqrt.f32 %v1733_v62  ;;  %v1732_v0 = vadd.f32 1e-05, %v1730_v63 }
 0xf27   :  { %4114 = vrsqrt.f32 %v1732_v0 }
 0xf32   :  { %v4113_v1 = vpop.eup %4112 }
 0xf33   :  { %v1737_v4 = vmul.f32 %v4113_v1, %v1721_v49 }
 0xf34   :  { %v4115_v5 = vpop.eup %4114 }
 0xf35   :  { %v1736_v7 = vmul.f32 %v4115_v5, %v1720_v27  ;;  %v1745_v8 = vmul.f32 %v3501_v2, %v1737_v4 }
 0xf37   :  { %v1744_v10 = vmul.f32 %v3501_v2, %v1736_v7  ;;  %v1753_v59 = vadd.f32 %v3502_v9, %v1745_v8 }
 0xf39   :  { %v1752_v11 = vadd.f32 %v3502_v9, %v1744_v10 }
 0xf3b   :  { %3911 = vmatprep.mubr.msk.f32.mxu0 %vm175_vm5, %v1752_v11  ;;  %v3509_v11 = vld [vmem:[%s4871_s7 + $0x20] sm:$0xff] }
 0xf3c   :  { %3912 = vmatmul.mubr.msk.f32.vlgmr.msra.gmra.mxu0 %vm175_vm5, %v1753_v59 }
 0xffc   :  { %v4606_v12 = vpop.f32.mrf.mxu0 }
 0xffd   :  { %1849 = vrot.lane.b32.xlu1 %v4606_v12, %s4168_s20 }
 0xffe   :  { %v4610_v13 = vpop.f32.mrf.mxu0 }
 0xfff   :  { %1847 = vrot.lane.b32.xlu0 %v4610_v13, %s4168_s20  ;;  %3918 = vmatprep.mubr.msk.f32.mxu0 %vm314_vm6, %v4610_v13  ;;  %s4900_s20 = smov 72  }
0x106f   :  { %v1850_v16 = vpop.permute.xlu1 %1849 }
0x1070   :  { %3914 = vmatprep.subr.msk.mxu0 %vm314_vm6, %v1850_v16 }
0x1071   :  { %3915 = vmatpush3.xpose.msk.msra.mxu0 %vm314_vm6, %v1850_v16  ;;  %v1848_v17 = vpop.permute.xlu0 %1847 }
0x1072   :  { %3916 = vmatprep.subr.msk.mxu0 %vm314_vm6, %v1848_v17 }
0x1075   :  { %3917 = vmatpush3.xpose.msk.msra.mxu0 %vm314_vm6, %v1848_v17 }
0x1078   :  { %3919 = vmatmul.mubr.msk.f32.vlgmr.msra.gmra.mxu0 %vm314_vm6, %v4606_v12 }
0x1138   :  { %v3920_v18 = vpop.f32.mrf.mxu0 }
0x1139   :  { %v1935_v19 = vmul.f32 0.35355338, %v3920_v18 }
0x113a   :  { %v1925_v20 = vpop.f32.mrf.mxu0 }
0x113b   :  { %v1934_v21 = vmul.f32 0.35355338, %v1925_v20  ;;  %v1937_v22 = vadd.f32 %v1935_v19, %v4375_v3 }
0x113d   :  { %v1941_v23 = vsel %vm402_vm7, %v1937_v22, -inf  ;;  %v1936_v26 = vadd.f32 %v1934_v21, %v4380_v6 }
0x113e   :  { %1942 = vmax.xlane.f32.xlu0 %v1941_v23 }
0x113f   :  { %v1938_v28 = vsel %vm402_vm7, %v1936_v26, -inf }
0x1140   :  { %1939 = vmax.xlane.f32.xlu1 %v1938_v28 }
0x1151   :  { %1962 = vrot.lane.b32.xlu1 %v4606_v12, %s4171_s28 }
0x1155   :  { %2053 = vrot.lane.b32.xlu1 %v4606_v12, %s4170_s23 }
0x1159   :  { %2051 = vrot.lane.b32.xlu1 %v4610_v13, %s4170_s23 }
0x11c7   :  { %v1943_v14 = vpop.xlane.xlu0 %1942 }
0x11c8   :  { %v1945_v15 = vsub.f32 %v1937_v22, %v1943_v14 }
0x11c9   :  { %v1940_v30 = vpop.xlane.xlu1 %1939 }
0x11ca   :  { %v1948_v31 = vmul.f32 1.442695, %v1945_v15  ;;  %v1944_v32 = vsub.f32 %v1936_v26, %v1940_v30 }
0x11cc   :  { %4116 = vpow2.f32 %v1948_v31  ;;  %v1946_v33 = vmul.f32 1.442695, %v1944_v32 }
0x11cd   :  { %v1963_v34 = vpop.permute.xlu1 %1962 }
0x11ce   :  { %4118 = vpow2.f32 %v1946_v33  ;;  %3921 = vmatprep.subr.mxu0 %v1963_v34 }
0x11cf   :  { %3922 = vmatpush3.msra.mxu0 %v1963_v34 }
0x11d1   :  { %v2054_v37 = vpop.permute.xlu1 %2053 }
0x11d5   :  { %v2052_v38 = vpop.permute.xlu1 %2051 }
0x11d9   :  { %v4117_v25 = vpop.eup %4116 }
0x11da   :  { %v1953_v35 = vsel %vm402_vm7, %v4117_v25, 0.0 }
0x11db   :  { %v4119_v24 = vpop.eup %4118  ;;  %1954 = vadd.xlane.f32.xlu0 %v1953_v35  ;;  %v4164_v35 = vld [vmem:[%s4870_s3 + $0x8] sm:$0xff] }
0x11dc   :  { %v1950_v36 = vsel %vm402_vm7, %v4119_v24, 0.0 }
0x11dd   :  { %1951 = vadd.xlane.f32.xlu1 %v1950_v36 }
0x11ee   :  { %2049 = vrot.lane.b32.xlu1 %v4606_v12, %s4169_s2 }
0x11f1   :  { %1960 = vrot.lane.b32.xlu0 %v4610_v13, %s4171_s28 }
0x11f5   :  { %2047 = vrot.lane.b32.xlu0 %v4610_v13, %s4169_s2  ;;  %s4901_s2 = smov 104  }
0x1264   :  { %v1955_v39 = vpop.xlane.xlu0 %1954 }
0x1265   :  { %4120 = vrcp.f32 %v1955_v39 }
0x1266   :  { %v1952_v40 = vpop.xlane.xlu1 %1951 }
0x1267   :  { %4122 = vrcp.f32 %v1952_v40 }
0x1268   :  { %v1961_v42 = vpop.permute.xlu0 %1960 }
0x1269   :  { %3923 = vmatprep.subr.mxu0 %v1961_v42 }
0x126a   :  { %3924 = vmatpush3.msra.mxu0 %v1961_v42  ;;  %v2050_v49 = vpop.permute.xlu1 %2049 }
0x126b   :  { %3928 = vmatprep.subr.msk.mxu0 %vm314_vm6, %v2054_v37 }
0x126c   :  { %v2048_v48 = vpop.permute.xlu0 %2047 }
0x1272   :  { %v4121_v44 = vpop.eup %4120 }
0x1273   :  { %v1959_v47 = vmul.f32 %v4121_v44, %v4117_v25 }
0x1274   :  { %v4123_v45 = vpop.eup %4122 }
0x1275   :  { %v1957_v46 = vmul.f32 %v4123_v45, %v4119_v24 }
0x1277   :  { %3925 = vmatprep.mubr.msk.f32.mxu0 %vm402_vm7, %v1957_v46 }
0x1278   :  { %3926 = vmatmul.mubr.msk.f32.vlgmr.msra.gmra.mxu0 %vm402_vm7, %v1959_v47 }
0x1279   :  { %3929 = vmatpush3.xpose.msk.msra.mxu0 %vm314_vm6, %v2054_v37  ;;  %3932 = vmatprep.mubr.msk.f32.mxu0 %vm314_vm6, %v2048_v48  ;;  %v4165_v37 = vld [vmem:[%s4870_s3] sm:$0xff]  ;;  %s4903_s3 = smov 40  }
0x127a   :  { %3930 = vmatprep.subr.msk.mxu0 %vm314_vm6, %v2052_v38 }
0x127d   :  { %3931 = vmatpush3.xpose.msk.msra.mxu0 %vm314_vm6, %v2052_v38 }
0x127e   :  { %3942 = vmatprep.subr.mxu0 %v3510_v58 }
0x1280   :  { %3933 = vmatmul.mubr.msk.f32.vlgmr.msra.gmra.mxu0 %vm314_vm6, %v2050_v49 }
0x1281   :  { %3943 = vmatpush3.msra.mxu0 %v3510_v58 }
0x1338   :  { %v3927_v50 = vpop.f32.mrf.mxu0 }
0x133a   :  { %v2038_v27 = vpop.f32.mrf.mxu0 }
0x1340   :  { %v3934_v51 = vpop.f32.mrf.mxu0 }
0x1341   :  { %v2139_v29 = vmul.f32 0.35355338, %v3934_v51 }
0x1342   :  { %v2129_v52 = vpop.f32.mrf.mxu0 }
0x1343   :  { %v2138_v53 = vmul.f32 0.35355338, %v2129_v52  ;;  %v2141_v54 = vadd.f32 %v2139_v29, %v4375_v3 }
0x1345   :  { %v2145_v55 = vsel %vm402_vm7, %v2141_v54, -inf  ;;  %v2140_v56 = vadd.f32 %v2138_v53, %v4380_v6 }
0x1346   :  { %2146 = vmax.xlane.f32.xlu1 %v2145_v55 }
0x1347   :  { %v2142_v57 = vsel %vm402_vm7, %v2140_v56, -inf }
0x1348   :  { %2143 = vmax.xlane.f32.xlu0 %v2142_v57 }
0x1357   :  { %2166 = vrot.lane.b32.xlu1 %v4606_v12, %s4172_s29 }
0x135b   :  { %2419 = vrot.lane.b32.xlu1 %v4606_v12, %s4173_s30 }
0x135f   :  { %2417 = vrot.lane.b32.xlu1 %v4610_v13, %s4173_s30 }
0x1363   :  { %2415 = vrot.lane.b32.xlu1 %v4606_v12, %s4174_s0 }
0x1367   :  { %2704 = vrot.lane.b32.xlu1 %v4610_v13, %s4900_s20 }
0x136b   :  { %2702 = vrot.lane.b32.xlu1 %v4606_v12, %s4901_s2 }
0x13cf   :  { %v2147_v3 = vpop.xlane.xlu1 %2146 }
0x13d0   :  { %v2149_v6 = vsub.f32 %v2141_v54, %v2147_v3 }
0x13d1   :  { %v2144_v60 = vpop.xlane.xlu0 %2143 }
0x13d2   :  { %v2152_v61 = vmul.f32 1.442695, %v2149_v6  ;;  %v2148_v62 = vsub.f32 %v2140_v56, %v2144_v60 }
0x13d3   :  { %v2167_v63 = vpop.permute.xlu1 %2166 }
0x13d4   :  { %4124 = vpow2.f32 %v2152_v61  ;;  %v2150_v0 = vmul.f32 1.442695, %v2148_v62  ;;  %3935 = vmatprep.subr.mxu1 %v2167_v63 }
0x13d5   :  { %3936 = vmatpush3.msra.mxu1 %v2167_v63 }
0x13d6   :  { %4126 = vpow2.f32 %v2150_v0 }
0x13d7   :  { %v2420_v1 = vpop.permute.xlu1 %2419 }
0x13d8   :  { %3952 = vmatprep.subr.msk.mxu0 %vm314_vm6, %v2420_v1 }
0x13db   :  { %v2418_v21 = vpop.permute.xlu1 %2417 }
0x13df   :  { %v2416_v26 = vpop.permute.xlu1 %2415 }
0x13e1   :  { %v4125_v2 = vpop.eup %4124 }
0x13e2   :  { %v2157_v4 = vsel %vm402_vm7, %v4125_v2, 0.0 }
0x13e3   :  { %v4127_v5 = vpop.eup %4126  ;;  %2158 = vadd.xlane.f32.xlu0 %v2157_v4  ;;  %v2705_v14 = vpop.permute.xlu1 %2704 }
0x13e4   :  { %v2154_v7 = vsel %vm402_vm7, %v4127_v5, 0.0 }
0x13e7   :  { %2155 = vadd.xlane.f32.xlu0 %v2154_v7  ;;  %v2703_v15 = vpop.permute.xlu1 %2702 }
0x13fd   :  { %2164 = vrot.lane.b32.xlu0 %v4610_v13, %s4172_s29 }
0x1401   :  { %2413 = vrot.lane.b32.xlu0 %v4610_v13, %s4174_s0 }
0x1405   :  { %2706 = vrot.lane.b32.xlu0 %v4606_v12, %s4900_s20 }
0x1409   :  { %2700 = vrot.lane.b32.xlu0 %v4610_v13, %s4901_s2 }
0x146c   :  { %v2159_v8 = vpop.xlane.xlu0 %2158 }
0x146d   :  { %4128 = vrcp.f32 %v2159_v8 }
0x1470   :  { %v2156_v9 = vpop.xlane.xlu0 %2155 }
0x1471   :  { %4130 = vrcp.f32 %v2156_v9 }
0x1474   :  { %v2165_v10 = vpop.permute.xlu0 %2164 }
0x1475   :  { %3937 = vmatprep.subr.mxu1 %v2165_v10 }
0x1476   :  { %3938 = vmatpush3.msra.mxu1 %v2165_v10 }
0x1477   :  { %3947 = vmatprep.subr.mxu1 %v3509_v11 }
0x1478   :  { %v2414_v19 = vpop.permute.xlu0 %2413 }
0x147a   :  { %v4129_v59 = vpop.eup %4128 }
0x147b   :  { %v2163_v18 = vmul.f32 %v4129_v59, %v4125_v2  ;;  %v3511_v2 = vld [vmem:[%s4871_s7 + $0x30] sm:$0xff] }
0x147c   :  { %v2707_v23 = vpop.permute.xlu0 %2706 }
0x147e   :  { %v4131_v16 = vpop.eup %4130 }
0x147f   :  { %v2161_v17 = vmul.f32 %v4131_v16, %v4127_v5 }
0x1480   :  { %v2701_v28 = vpop.permute.xlu0 %2700 }
0x1481   :  { %3939 = vmatprep.mubr.msk.f32.mxu1 %vm402_vm7, %v2161_v17 }
0x1482   :  { %3940 = vmatmul.mubr.msk.f32.vlgmr.msra.gmra.mxu1 %vm402_vm7, %v2163_v18 }
0x1483   :  { %3949 = vmatprep.mubr.msk.f32.mxu1 %vm314_vm6, %v2038_v27  ;;  %3948 = vmatpush3.msra.mxu1 %v3509_v11 }
0x1486   :  { %3950 = vmatmul.mubr.msk.f32.vlgmr.msra.gmra.mxu1 %vm314_vm6, %v3927_v50 }
0x1542   :  { %v3941_v20 = vpop.f32.mrf.mxu1 }
0x1544   :  { %v2242_v22 = vpop.f32.mrf.mxu1 }
0x1545   :  { %3944 = vmatprep.mubr.msk.f32.mxu0 %vm314_vm6, %v2242_v22 }
0x1546   :  { %3945 = vmatmul.mubr.msk.f32.vlgmr.msra.gmra.mxu0 %vm314_vm6, %v3941_v20  ;;  %v3951_v18 = vpop.f32.mrf.mxu1 }
0x1547   :  { %3953 = vmatpush3.xpose.msk.msra.mxu0 %vm314_vm6, %v2420_v1  ;;  %3956 = vmatprep.mubr.msk.f32.mxu0 %vm314_vm6, %v2414_v19 }
0x1548   :  { %3954 = vmatprep.subr.msk.mxu0 %vm314_vm6, %v2418_v21  ;;  %v2404_v19 = vpop.f32.mrf.mxu1 }
0x154b   :  { %3955 = vmatpush3.xpose.msk.msra.mxu0 %vm314_vm6, %v2418_v21 }
0x154c   :  { %3971 = vmatprep.subr.msk.mxu0 %vm314_vm6, %v2707_v23 }
0x154e   :  { %3957 = vmatmul.mubr.msk.f32.vlgmr.msra.gmra.mxu0 %vm314_vm6, %v2416_v26 }
0x154f   :  { %3972 = vmatpush3.xpose.msk.msra.mxu0 %vm314_vm6, %v2707_v23  ;;  %3975 = vmatprep.mubr.msk.f32.mxu0 %vm314_vm6, %v2701_v28 }
0x1550   :  { %3973 = vmatprep.subr.msk.mxu0 %vm314_vm6, %v2705_v14 }
0x1553   :  { %3974 = vmatpush3.xpose.msk.msra.mxu0 %vm314_vm6, %v2705_v14 }
0x1556   :  { %3976 = vmatmul.mubr.msk.f32.vlgmr.msra.gmra.mxu0 %vm314_vm6, %v2703_v15  ;;  %v3512_v15 = vld [vmem:[%s4871_s7 + $0x38] sm:$0xff] }
0x1606   :  { %v4698_v30 = vpop.f32.mrf.mxu0 }
0x1608   :  { %v4700_v31 = vpop.f32.mrf.mxu0 }
0x160e   :  { %v3958_v32 = vpop.f32.mrf.mxu0 }
0x160f   :  { %v2505_v33 = vmul.f32 0.35355338, %v3958_v32  ;;  %v2410_v32 = vadd.f32 %v3951_v18, %v4698_v30  ;;  %v3565_v18 = vld [vmem:[%s4875_s12 + $0xc0] sm:$0xff] }
0x1610   :  { %v2495_v34 = vpop.f32.mrf.mxu0 }
0x1611   :  { %v2504_v25 = vmul.f32 0.35355338, %v2495_v34  ;;  %v2507_v24 = vadd.f32 %v4164_v35, %v2505_v33  ;;  %v2405_v34 = vadd.f32 %v2404_v19, %v4700_v31  ;;  %v3564_v19 = vld [vmem:[%s4875_s12 + $0xb8] sm:$0xff] }
0x1613   :  { %v2511_v36 = vsel %vm402_vm7, %v2507_v24, -inf  ;;  %v2506_v38 = vadd.f32 %v4165_v37, %v2504_v25 }
0x1614   :  { %2512 = vmax.xlane.f32.xlu1 %v2511_v36 }
0x1615   :  { %v2508_v39 = vsel %vm402_vm7, %v2506_v38, -inf }
0x1616   :  { %2509 = vmax.xlane.f32.xlu0 %v2508_v39  ;;  %v3977_v40 = vpop.f32.mrf.mxu0 }
0x1617   :  { %v2792_v3 = vmul.f32 0.35355338, %v3977_v40 }
0x1618   :  { %v2782_v42 = vpop.f32.mrf.mxu0 }
0x1619   :  { %v2791_v44 = vmul.f32 0.35355338, %v2782_v42  ;;  %v2794_v61 = vadd.f32 %v4164_v35, %v2792_v3 }
0x161b   :  { %v2793_v45 = vadd.f32 %v4165_v37, %v2791_v44  ;;  %v2798_v62 = vsel %vm402_vm7, %v2794_v61, -inf }
0x161d   :  { %v2795_v46 = vsel %vm402_vm7, %v2793_v45, -inf }
0x1625   :  { %2532 = vrot.lane.b32.xlu1 %v4606_v12, %s4902_s21 }
0x1649   :  { %2796 = vmax.xlane.f32.xlu1 %v2795_v46 }
0x169d   :  { %v2513_v47 = vpop.xlane.xlu1 %2512 }
0x169e   :  { %v2515_v48 = vsub.f32 %v2507_v24, %v2513_v47 }
0x169f   :  { %v2510_v49 = vpop.xlane.xlu0 %2509 }
0x16a0   :  { %v2518_v50 = vmul.f32 1.442695, %v2515_v48  ;;  %v2514_v27 = vsub.f32 %v2506_v38, %v2510_v49 }
0x16a1   :  { %v2533_v51 = vpop.permute.xlu1 %2532 }
0x16a2   :  { %4132 = vpow2.f32 %v2518_v50  ;;  %v2516_v29 = vmul.f32 1.442695, %v2514_v27  ;;  %3959 = vmatprep.subr.mxu1 %v2533_v51 }
0x16a3   :  { %3960 = vmatpush3.msra.mxu1 %v2533_v51 }
0x16a4   :  { %4134 = vpow2.f32 %v2516_v29 }
0x16af   :  { %v4133_v52 = vpop.eup %4132 }
0x16b0   :  { %v2523_v53 = vsel %vm402_vm7, %v4133_v52, 0.0 }
0x16b1   :  { %v4135_v54 = vpop.eup %4134  ;;  %2524 = vadd.xlane.f32.xlu0 %v2523_v53  ;;  %v3551_v53 = vld [vmem:[%s4872_s10 + $0x30] sm:$0xff] }
0x16b2   :  { %v2520_v55 = vsel %vm402_vm7, %v4135_v54, 0.0 }
0x16b5   :  { %2521 = vadd.xlane.f32.xlu0 %v2520_v55  ;;  %v3549_v55 = vld [vmem:[%s4872_s10 + $0x20] sm:$0xff] }
0x16cb   :  { %2530 = vrot.lane.b32.xlu0 %v4610_v13, %s4902_s21 }
0x16d2   :  { %v2797_v56 = vpop.xlane.xlu1 %2796 }
0x16d3   :  { %v2801_v57 = vsub.f32 %v2793_v45, %v2797_v56 }
0x16d5   :  { %v2803_v58 = vmul.f32 1.442695, %v2801_v57 }
0x16d7   :  { %4136 = vpow2.f32 %v2803_v58 }
0x16e4   :  { %v4137_v6 = vpop.eup %4136 }
0x16e5   :  { %v2807_v60 = vsel %vm402_vm7, %v4137_v6, 0.0 }
0x16e6   :  { %2808 = vadd.xlane.f32.xlu1 %v2807_v60 }
0x16ea   :  { %2799 = vmax.xlane.f32.xlu0 %v2798_v62  ;;  %v3547_v62 = vld [vmem:[%s4873_s8 + $0x1] ss:$0 sm:$0xff] }
0x16f7   :  { %2819 = vrot.lane.b32.xlu1 %v4606_v12, %s4903_s3 }
0x173a   :  { %v2525_v63 = vpop.xlane.xlu0 %2524 }
0x173b   :  { %4138 = vrcp.f32 %v2525_v63 }
0x173e   :  { %v2522_v0 = vpop.xlane.xlu0 %2521 }
0x173f   :  { %4140 = vrcp.f32 %v2522_v0 }
0x1742   :  { %v2531_v1 = vpop.permute.xlu0 %2530 }
0x1743   :  { %3961 = vmatprep.subr.mxu1 %v2531_v1 }
0x1744   :  { %3962 = vmatpush3.msra.mxu1 %v2531_v1 }
0x1745   :  { %3966 = vmatprep.subr.mxu1 %v3511_v2 }
0x1748   :  { %v4139_v4 = vpop.eup %4138 }
0x1749   :  { %v2529_v8 = vmul.f32 %v4139_v4, %v4133_v52  ;;  %v3552_v52 = vld [vmem:[%s4872_s10 + $0x38] sm:$0xff]  ;;  %v3548_v4 = vld [vmem:[%s4874_s9 + $0x1] ss:$0 sm:$0xff] }
0x174a   :  { %3990 = vmatprep.subr.mxu0 %v3552_v52 }
0x174b   :  { %3991 = vmatpush3.msra.mxu0 %v3552_v52  ;;  %v3249_v52 = vld [vmem:[%s4878_s14] sm:$0xff] }
0x174c   :  { %v4141_v5 = vpop.eup %4140  ;;  %3992 = vmatprep.subr.mxu0 %v3551_v53 }
0x174d   :  { %v2527_v7 = vmul.f32 %v4141_v5, %v4135_v54  ;;  %v3550_v54 = vld [vmem:[%s4872_s10 + $0x28] sm:$0xff]  ;;  %3993 = vmatpush3.msra.mxu0 %v3551_v53  ;;  %v3574_v53 = vld [vmem:[%s4877_s13 + $0x1] ss:$0 sm:$0xff] }
0x174e   :  { %3994 = vmatprep.subr.mxu0 %v3550_v54 }
0x174f   :  { %3963 = vmatprep.mubr.msk.f32.mxu1 %vm402_vm7, %v2527_v7  ;;  %3995 = vmatpush3.msra.mxu0 %v3550_v54 }
0x1750   :  { %3964 = vmatmul.mubr.msk.f32.vlgmr.msra.gmra.mxu1 %vm402_vm7, %v2529_v8  ;;  %3996 = vmatprep.subr.mxu0 %v3549_v55 }
0x1751   :  { %3967 = vmatpush3.msra.mxu1 %v3511_v2  ;;  %3997 = vmatpush3.msra.mxu0 %v3549_v55 }
0x176f   :  { %v2809_v12 = vpop.xlane.xlu1 %2808 }
0x1773   :  { %v2820_v9 = vpop.permute.xlu1 %2819  ;;  %v2800_v10 = vpop.xlane.xlu0 %2799 }
0x1774   :  { %v2802_v11 = vsub.f32 %v2794_v61, %v2800_v10  ;;  %3978 = vmatprep.subr.mxu1 %v2820_v9  ;;  %v3570_v10 = vld [vmem:[%s4875_s12 + $0xe8] sm:$0xff] }
0x1776   :  { %v2805_v59 = vmul.f32 1.442695, %v2802_v11  ;;  %v3569_v11 = vld [vmem:[%s4875_s12 + $0xe0] sm:$0xff] }
0x1778   :  { %4142 = vpow2.f32 %v2805_v59  ;;  %v3568_v59 = vld [vmem:[%s4875_s12 + $0xd8] sm:$0xff] }
0x1779   :  { %4144 = vrcp.f32 %v2809_v12  ;;  %v3572_v12 = vld [vmem:[%s4875_s12 + $0xf8] sm:$0xff] }
0x1785   :  { %v4143_v16 = vpop.eup %4142 }
0x1786   :  { %v2810_v17 = vsel %vm402_vm7, %v4143_v16, 0.0  ;;  %v4145_v20 = vpop.eup %4144 }
0x1787   :  { %2811 = vadd.xlane.f32.xlu0 %v2810_v17  ;;  %v2814_v26 = vmul.f32 %v4145_v20, %v4137_v6  ;;  %v3566_v17 = vld [vmem:[%s4875_s12 + $0xc8] sm:$0xff]  ;;  %v3563_v20 = vld [vmem:[%s4875_s12 + $0xb0] sm:$0xff] }
0x179d   :  { %2817 = vrot.lane.b32.xlu0 %v4610_v13, %s4903_s3 }
0x1810   :  { %v3965_v21 = vpop.f32.mrf.mxu1  ;;  %v2812_v22 = vpop.xlane.xlu0 %2811 }
0x1811   :  { %4146 = vrcp.f32 %v2812_v22  ;;  %v3561_v22 = vld [vmem:[%s4875_s12 + $0xa0] sm:$0xff] }
0x1812   :  { %v2608_v23 = vpop.f32.mrf.mxu1 }
0x1813   :  { %3968 = vmatprep.mubr.msk.f32.mxu1 %vm314_vm6, %v2608_v23  ;;  %v3560_v23 = vld [vmem:[%s4875_s12 + $0x98] sm:$0xff] }
0x1814   :  { %3969 = vmatmul.mubr.msk.f32.vlgmr.msra.gmra.mxu1 %vm314_vm6, %v3965_v21  ;;  %v2818_v28 = vpop.permute.xlu0 %2817  ;;  %v3562_v21 = vld [vmem:[%s4875_s12 + $0xa8] sm:$0xff] }
0x1815   :  { %3979 = vmatpush3.msra.mxu1 %v2820_v9  ;;  %3982 = vmatprep.mubr.msk.f32.mxu1 %vm402_vm7, %v2814_v26  ;;  %v3571_v9 = vld [vmem:[%s4875_s12 + $0xf0] sm:$0xff] }
0x1816   :  { %3980 = vmatprep.subr.mxu1 %v2818_v28  ;;  %v3559_v26 = vld [vmem:[%s4875_s12 + $0x90] sm:$0xff] }
0x1817   :  { %3981 = vmatpush3.msra.mxu1 %v2818_v28  ;;  %v3558_v28 = vld [vmem:[%s4875_s12 + $0x88] sm:$0xff] }
0x1818   :  { %3985 = vmatprep.subr.mxu1 %v3512_v15 }
0x181e   :  { %v4147_v13 = vpop.eup %4146 }
0x181f   :  { %v2816_v14 = vmul.f32 %v4147_v13, %v4143_v16  ;;  %v3567_v16 = vld [vmem:[%s4875_s12 + $0xd0] sm:$0xff]  ;;  %v3557_v13 = vld [vmem:[%s4875_s12 + $0x80] sm:$0xff] }
0x1821   :  { %3983 = vmatmul.mubr.msk.f32.vlgmr.msra.gmra.mxu1 %vm402_vm7, %v2816_v14  ;;  %v3554_v14 = vld [vmem:[%s4876_s11 + $0x1] ss:$0 sm:$0xff] }
0x1822   :  { %3986 = vmatpush3.msra.mxu1 %v3512_v15 }
0x1823   :  { %4001 = vmatprep.subr.mxu1 %v3572_v12 }
0x18d4   :  { %v3970_v33 = vpop.f32.mrf.mxu1 }
0x18d5   :  { %v2699_v25 = vadd.f32 %v3970_v33, %v2410_v32 }
0x18d6   :  { %v2689_v35 = vpop.f32.mrf.mxu1 }
0x18d7   :  { %v2698_v24 = vadd.f32 %v2689_v35, %v2405_v34 }
0x18e1   :  { %v3984_v36 = vpop.f32.mrf.mxu1 }
0x18e3   :  { %v2895_v37 = vpop.f32.mrf.mxu1 }
0x18e4   :  { %3987 = vmatprep.mubr.msk.f32.mxu1 %vm314_vm6, %v2895_v37 }
0x18e5   :  { %3988 = vmatmul.mubr.msk.f32.vlgmr.msra.gmra.mxu1 %vm314_vm6, %v3984_v36 }
0x18e6   :  { %4002 = vmatpush3.msra.mxu1 %v3572_v12 }
0x18e7   :  { %4003 = vmatprep.subr.mxu1 %v3571_v9 }
0x18e8   :  { %4004 = vmatpush3.msra.mxu1 %v3571_v9 }
0x18e9   :  { %4005 = vmatprep.subr.mxu1 %v3570_v10 }
0x18ea   :  { %4006 = vmatpush3.msra.mxu1 %v3570_v10 }
0x18eb   :  { %4007 = vmatprep.subr.mxu1 %v3569_v11 }
0x18ec   :  { %4008 = vmatpush3.msra.mxu1 %v3569_v11 }
0x18ed   :  { %4009 = vmatprep.subr.mxu1 %v3568_v59 }
0x18ee   :  { %4010 = vmatpush3.msra.mxu1 %v3568_v59 }
0x18ef   :  { %4011 = vmatprep.subr.mxu1 %v3567_v16 }
0x18f0   :  { %4012 = vmatpush3.msra.mxu1 %v3567_v16 }
0x18f1   :  { %4013 = vmatprep.subr.mxu1 %v3566_v17 }
0x18f2   :  { %4014 = vmatpush3.msra.mxu1 %v3566_v17 }
0x18f3   :  { %4015 = vmatprep.subr.mxu1 %v3565_v18 }
0x18f4   :  { %4016 = vmatpush3.msra.mxu1 %v3565_v18 }
0x18f5   :  { %4017 = vmatprep.subr.mxu1 %v3564_v19 }
0x18f6   :  { %4018 = vmatpush3.msra.mxu1 %v3564_v19 }
0x18f7   :  { %4019 = vmatprep.subr.mxu1 %v3563_v20 }
0x18f8   :  { %4020 = vmatpush3.msra.mxu1 %v3563_v20 }
0x18f9   :  { %4021 = vmatprep.subr.mxu1 %v3562_v21 }
0x18fa   :  { %4022 = vmatpush3.msra.mxu1 %v3562_v21 }
0x18fb   :  { %4023 = vmatprep.subr.mxu1 %v3561_v22 }
0x18fc   :  { %4024 = vmatpush3.msra.mxu1 %v3561_v22 }
0x18fd   :  { %4025 = vmatprep.subr.mxu1 %v3560_v23 }
0x18fe   :  { %4026 = vmatpush3.msra.mxu1 %v3560_v23 }
0x18ff   :  { %4027 = vmatprep.subr.mxu1 %v3559_v26 }
0x1900   :  { %4028 = vmatpush3.msra.mxu1 %v3559_v26 }
0x1901   :  { %4029 = vmatprep.subr.mxu1 %v3558_v28 }
0x1902   :  { %4030 = vmatpush3.msra.mxu1 %v3558_v28 }
0x1903   :  { %4031 = vmatprep.subr.mxu1 %v3557_v13 }
0x1904   :  { %4032 = vmatpush3.msra.mxu1 %v3557_v13 }
0x19a5   :  { %v3989_v38 = vpop.f32.mrf.mxu1 }
0x19a6   :  { %v2986_v39 = vadd.f32 %v3989_v38, %v2699_v25 }
0x19a7   :  { %v2976_v40 = vpop.f32.mrf.mxu1 }
0x19a8   :  { %v4741_v42 = vadd.f32 %v2986_v39, %v4573_v41  ;;  %v2985_v44 = vadd.f32 %v2976_v40, %v2698_v24 }
0x19aa   :  { %v4744_v30 = vadd.f32 %v2985_v44, %v4576_v43  ;;  %v2996_v31 = vsel %vm175_vm5, %v4741_v42, 0.0 }
0x19ab   :  { %2997 = vadd.xlane.f32.xlu0 %v2996_v31 }
0x19ac   :  { %v2993_v45 = vsel %vm175_vm5, %v4744_v30, 0.0 }
0x19ad   :  { %2994 = vadd.xlane.f32.xlu1 %v2993_v45 }
0x1a34   :  { %v2998_v46 = vpop.xlane.xlu0 %2997 }
0x1a35   :  { %v3000_v47 = vmul.f32 0.03125, %v2998_v46 }
0x1a36   :  { %v2995_v48 = vpop.xlane.xlu1 %2994 }
0x1a37   :  { %v3002_v49 = vsub.f32 %v4741_v42, %v3000_v47  ;;  %v2999_v50 = vmul.f32 0.03125, %v2995_v48 }
0x1a39   :  { %v3001_v41 = vsub.f32 %v4744_v30, %v2999_v50  ;;  %v3004_v27 = vmul.f32 %v3002_v49, %v3002_v49 }
0x1a3b   :  { %v3008_v43 = vsel %vm175_vm5, %v3004_v27, 0.0  ;;  %v3003_v51 = vmul.f32 %v3001_v41, %v3001_v41 }
0x1a3c   :  { %3009 = vadd.xlane.f32.xlu0 %v3008_v43  ;;  %v3252_v43 = vld [vmem:[%s4878_s14 + $0x18] sm:$0xff] }
0x1a3d   :  { %v3005_v29 = vsel %vm175_vm5, %v3003_v51, 0.0  ;;  %4036 = vmatprep.subr.mxu0 %v3252_v43  ;;  %v3251_v51 = vld [vmem:[%s4878_s14 + $0x10] sm:$0xff] }
0x1a3e   :  { %3006 = vadd.xlane.f32.xlu1 %v3005_v29  ;;  %v3250_v29 = vld [vmem:[%s4878_s14 + $0x8] sm:$0xff] }
0x1ac5   :  { %v3010_v56 = vpop.xlane.xlu0 %3009 }
0x1ac6   :  { %v3012_v57 = vmul.f32 0.03125, %v3010_v56 }
0x1ac7   :  { %v3007_v58 = vpop.xlane.xlu1 %3006 }
0x1ac8   :  { %v3014_v3 = vadd.f32 1e-05, %v3012_v57  ;;  %v3011_v6 = vmul.f32 0.03125, %v3007_v58 }
0x1aca   :  { %4148 = vrsqrt.f32 %v3014_v3  ;;  %v3013_v60 = vadd.f32 1e-05, %v3011_v6  ;;  %v3344_v6 = vld [vmem:[%s4879_s16 + $0x8] sm:$0xff] }
0x1acc   :  { %4150 = vrsqrt.f32 %v3013_v60  ;;  %v3343_v60 = vld [vmem:[%s4879_s16] sm:$0xff] }
0x1ad7   :  { %v4149_v61 = vpop.eup %4148 }
0x1ad8   :  { %v3018_v63 = vmul.f32 %v4149_v61, %v3002_v49 }
0x1ad9   :  { %v4151_v0 = vpop.eup %4150 }
0x1ada   :  { %v3017_v1 = vmul.f32 %v4151_v0, %v3001_v41  ;;  %v3026_v2 = vmul.f32 %v3547_v62, %v3018_v63 }
0x1adc   :  { %v3025_v5 = vmul.f32 %v3547_v62, %v3017_v1  ;;  %v3034_v8 = vadd.f32 %v3548_v4, %v3026_v2  ;;  %v3578_v2 = vld [vmem:[%s4881_s17] ss:$0 sm:$0xff] }
0x1ade   :  { %v3033_v7 = vadd.f32 %v3548_v4, %v3025_v5 }
0x1ae0   :  { %3998 = vmatprep.mubr.msk.f32.mxu0 %vm175_vm5, %v3033_v7 }
0x1ae1   :  { %3999 = vmatmul.mubr.msk.f32.vlgmr.msra.gmra.mxu0 %vm175_vm5, %v3034_v8 }
0x1ae2   :  { %4037 = vmatpush3.msra.mxu0 %v3252_v43 }
0x1ae3   :  { %4038 = vmatprep.subr.mxu0 %v3251_v51 }
0x1ae4   :  { %4039 = vmatpush3.msra.mxu0 %v3251_v51 }
0x1ae5   :  { %4040 = vmatprep.subr.mxu0 %v3250_v29 }
0x1ae6   :  { %4041 = vmatpush3.msra.mxu0 %v3250_v29 }
0x1ae7   :  { %4042 = vmatprep.subr.mxu0 %v3249_v52 }
0x1ae8   :  { %4043 = vmatpush3.msra.mxu0 %v3249_v52 }
0x1ae9   :  { %4047 = vmatprep.subr.mxu0 %v3344_v6 }
0x1ba1   :  { %v4000_v15 = vpop.f32.mrf.mxu0 }
0x1ba2   :  { %v3126_v32 = vadd.f32 %v4000_v15, %v3554_v14 }
0x1ba3   :  { %v3120_v33 = vpop.f32.mrf.mxu0 }
0x1ba4   :  { %v3130_v34 = vmul.f32 %v3126_v32, %v3126_v32  ;;  %v3121_v25 = vadd.f32 %v3554_v14, %v3120_v33 }
0x1ba6   :  { %v3132_v35 = vmul.f32 %v3130_v34, %v3126_v32  ;;  %v3129_v24 = vmul.f32 %v3121_v25, %v3121_v25 }
0x1ba8   :  { %v3134_v36 = vmul.f32 0.044715, %v3132_v35  ;;  %v3131_v37 = vmul.f32 %v3129_v24, %v3121_v25 }
0x1baa   :  { %v3136_v38 = vadd.f32 %v3134_v36, %v3126_v32  ;;  %v3133_v39 = vmul.f32 0.044715, %v3131_v37 }
0x1bac   :  { %v3138_v40 = vmul.f32 0.7978846, %v3136_v38  ;;  %v3135_v44 = vadd.f32 %v3133_v39, %v3121_v25 }
0x1bae   :  { %4152 = vtanh.f32 %v3138_v40  ;;  %v3137_v31 = vmul.f32 0.7978846, %v3135_v44 }
0x1bb0   :  { %4154 = vtanh.f32 %v3137_v31 }
0x1bbb   :  { %v4153_v45 = vpop.eup %4152 }
0x1bbc   :  { %v3142_v46 = vadd.f32 1.0, %v4153_v45 }
0x1bbd   :  { %v4155_v47 = vpop.eup %4154 }
0x1bbe   :  { %v3141_v48 = vadd.f32 1.0, %v4155_v47  ;;  %v3144_v49 = vmul.f32 0.5, %v3142_v46 }
0x1bc0   :  { %v3143_v50 = vmul.f32 0.5, %v3141_v48  ;;  %v3146_v27 = vmul.f32 %v3144_v49, %v3126_v32 }
0x1bc2   :  { %v3145_v41 = vmul.f32 %v3143_v50, %v3121_v25 }
0x1bc4   :  { %4033 = vmatprep.mubr.f32.mxu1 %v3145_v41 }
0x1bc5   :  { %4034 = vmatmul.mubr.f32.vlgmr.msra.gmra.mxu1 %v3146_v27 }
0x1c85   :  { %v4035_v54 = vpop.f32.mrf.mxu1 }
0x1c86   :  { %v3244_v55 = vadd.f32 %v4035_v54, %v3574_v53 }
0x1c87   :  { %v3238_v56 = vpop.f32.mrf.mxu1 }
0x1c88   :  { %v3239_v57 = vadd.f32 %v3574_v53, %v3238_v56  ;;  %v3248_v3 = vadd.f32 %v3244_v55, %v4741_v42  ;;  %v3575_v42 = vld [vmem:[%s4880_s15] ss:$0 sm:$0xff] }
0x1c8a   :  { %v3247_v58 = vadd.f32 %v3239_v57, %v4744_v30 }
0x1c8c   :  { %4044 = vmatprep.mubr.msk.f32.mxu0 %vm175_vm5, %v3247_v58 }
0x1c8d   :  { %4045 = vmatmul.mubr.msk.f32.vlgmr.msra.gmra.mxu0 %vm175_vm5, %v3248_v3 }
0x1c8e   :  { %4048 = vmatpush3.msra.mxu0 %v3344_v6 }
0x1c8f   :  { %4049 = vmatprep.subr.mxu0 %v3343_v60 }
0x1c90   :  { %4050 = vmatpush3.msra.mxu0 %v3343_v60 }
0x1d4d   :  { %v4046_v30 = vpop.f32.mrf.mxu0 }
0x1d4e   :  { %v3338_v61 = vadd.f32 %v4046_v30, %v3575_v42 }
0x1d4f   :  { %v3332_v62 = vpop.f32.mrf.mxu0 }
0x1d50   :  { %v3333_v63 = vadd.f32 %v3575_v42, %v3332_v62  ;;  %v3342_v1 = vmax.f32 %v3338_v61, 0.0 }
0x1d52   :  { %v3341_v0 = vmax.f32 %v3333_v63, 0.0 }
0x1d54   :  { %4051 = vmatprep.mubr.msk.f32.mxu0 %vm402_vm7, %v3341_v0 }
0x1d55   :  { %4052 = vmatmul.mubr.msk.f32.vlgmr.msra.gmra.mxu0 %vm402_vm7, %v3342_v1 }
0x1e15   :  { %v4053_v4 = vpop.f32.mrf.mxu0 }
0x1e16   :  { %v3430_v5 = vadd.f32 %v4053_v4, %v3578_v2 }
0x1e17   :  { %v3424_v7 = vpop.f32.mrf.mxu0 }
0x1e18   :  { %v3434_v8 = vmax.f32 %v3430_v5, 0.0  ;;  %v3425_v12 = vadd.f32 %v3578_v2, %v3424_v7 }
0x1e1a   :  { %v3582_v9 = vmul.f32 -1.442695, %v3434_v8  ;;  %v3433_v10 = vmax.f32 %v3425_v12, 0.0 }
0x1e1c   :  { %4156 = vpow2.f32 %v3582_v9  ;;  %v3581_v11 = vmul.f32 -1.442695, %v3433_v10 }
0x1e1e   :  { %4158 = vpow2.f32 %v3581_v11 }
0x1e29   :  { %v4157_v59 = vpop.eup %4156 }
0x1e2a   :  { %v3442_v16 = vadd.f32 1.0, %v4157_v59 }
0x1e2b   :  { %v4159_v17 = vpop.eup %4158 }
0x1e2c   :  { %4160 = vrcp.f32 %v3442_v16  ;;  %v3441_v18 = vadd.f32 1.0, %v4159_v17 }
0x1e2e   :  { %4162 = vrcp.f32 %v3441_v18 }
0x1e39   :  { %v4161_v19 = vpop.eup %4160 }
0x1e3a   :  { %3448 = vst [vmem:[%s4882_s18 + $0x8] sm:$0xff] %v4161_v19 }
0x1e3b   :  { %v4163_v20 = vpop.eup %4162 }
0x1e3c   :  { %3447 = vst [vmem:[%s4882_s18] sm:$0xff] %v4163_v20 }

</bundles_post_ra>
